<compile_context>
chip_gen: v7x
topology: tpu7x:2x2x1
jax: 0.10.0
libtpu: 0.0.40
codegen_flags: <defaults>
</compile_context>

<pallas_src>
import jax
import jax.numpy as jnp
import numpy as np
from jax import lax
from jax.experimental import pallas as pl
from jax.experimental.pallas import tpu as pltpu

LANE = 128


def _ceil_to(x, m):
    return -(-x // m) * m


# ---------------------------------------------------------------------------
# Pallas kernel: GRU recurrence + last-word-state gather + fc2(relu(fc1(.)))
# ---------------------------------------------------------------------------
def gru_mlp_kernel(gx_ref, topic_ref, whh_ref, bhn_ref, w1_ref, b1_ref,
                   w2_ref, b2_ref, lidx_ref, out_ref):
    S, B, GP = gx_ref.shape          # GP = 3 * HP (one 128-lane group per gate)
    HP = whh_ref.shape[0]

    # ---- prologue (off the serial chain) ------------------------------------
    # Gx for every timestep lives in vregs; the time-invariant movie-onehot
    # contribution + folded biases are added once here, not per step.
    gx_all = gx_ref[...] + jnp.broadcast_to(topic_ref[...], (S, B, GP))

    # Hoisted broadcasts (would otherwise be replicated S times by the unroll).
    b_hn = jnp.broadcast_to(bhn_ref[...], (B, HP))        # (B, HP)
    lidx = jnp.broadcast_to(lidx_ref[...], (B, HP))       # (B, HP) int32

    h = jnp.zeros((B, HP), jnp.float32)                   # hidden=None -> zeros
    tmp = jnp.zeros((B, HP), jnp.float32)                 # running last-state gather

    # ---- serial GRU recurrence (PyTorch gate order r, z, n), fully unrolled --
    for t in range(S):
        gx = gx_all[t]                                    # (B, 3HP) static, tile-aligned
        gh = jnp.dot(h, whh_ref[...], preferred_element_type=jnp.float32)
        r = jax.nn.sigmoid(gx[:, 0:HP] + gh[:, 0:HP])
        z = jax.nn.sigmoid(gx[:, HP:2 * HP] + gh[:, HP:2 * HP])
        n = jnp.tanh(gx[:, 2 * HP:3 * HP] + r * (gh[:, 2 * HP:3 * HP] + b_hn))
        h = (1.0 - z) * n + z * h
        # running gather: tmp[i] = states[i][last_word_indices[i]]
        tmp = jnp.where(lidx == t, h, tmp)

    # ---- epilogue: fc2(relu(fc1(tmp))), lane-dense padded output ------------
    hid = jnp.maximum(
        jnp.dot(tmp, w1_ref[...], preferred_element_type=jnp.float32) + b1_ref[...],
        0.0)
    out_ref[...] = (jnp.dot(hid, w2_ref[...], preferred_element_type=jnp.float32)
                    + b2_ref[...])


# ---------------------------------------------------------------------------
# Wrapper: gate-table precompute + token gather + weight padding + pallas_call
# ---------------------------------------------------------------------------
def classification_forward(inputs, movie_idx, last_word_indices, params):
    emb_w = params['embedding'].astype(jnp.float32)            # (V, E)
    mov_oh = params['movie_to_onehot'].astype(jnp.float32)     # (M, E)
    V, E = emb_w.shape
    M = mov_oh.shape[0]
    B, S = inputs.shape
    H = params['w_hh'].shape[-1]
    F1 = params['fc1_w'].shape[-1]
    NL = params['fc2_w'].shape[-1]

    HP = _ceil_to(H, LANE)            # lane-aligned per-gate width
    GP = 3 * HP
    F1P = _ceil_to(F1, LANE)
    OUT_PAD = _ceil_to(max(NL, LANE), LANE)

    w_ih = params['w_ih']                          # (3, 3E, H) gate order r, z, n
    w_hh = params['w_hh']                          # (3, H, H)
    b_ih, b_hh = params['b_ih'], params['b_hh']    # (3, 1, H)

    # Per-gate, lane-aligned fused slabs.  The final E rows of W_ih always
    # multiply zeros (the zero half of topics_embed) and are dropped entirely.
    tok_table = jnp.zeros((V, GP), jnp.float32)    # per-vocab-token gate pre-activations
    mov_table = jnp.zeros((M, GP), jnp.float32)    # per-movie gate pre-activations
    bias_fold = jnp.zeros((1, GP), jnp.float32)    # [b_ir+b_hr | b_iz+b_hz | b_in]
    whh_p = jnp.zeros((HP, GP), jnp.float32)
    bias_vals = (b_ih[0] + b_hh[0], b_ih[1] + b_hh[1], b_ih[2])
    for g in range(3):
        c0 = g * HP
        tok_table = tok_table.at[:, c0:c0 + H].set(emb_w @ w_ih[g][0:E])
        mov_table = mov_table.at[:, c0:c0 + H].set(mov_oh @ w_ih[g][E:2 * E])
        bias_fold = bias_fold.at[:, c0:c0 + H].set(bias_vals[g])
        whh_p = whh_p.at[:H, c0:c0 + H].set(w_hh[g])
    b_hn_p = jnp.zeros((1, HP), jnp.float32).at[:, :H].set(b_hh[2])   # stays separate (scaled by r)

    fc1_w_p = jnp.zeros((HP, F1P), jnp.float32).at[:H, :F1].set(params['fc1_w'])
    fc1_b_p = jnp.zeros((1, F1P), jnp.float32).at[:, :F1].set(params['fc1_b'])
    fc2_w_p = jnp.zeros((F1P, OUT_PAD), jnp.float32).at[:F1, :NL].set(params['fc2_w'])
    fc2_b_p = jnp.zeros((1, OUT_PAD), jnp.float32).at[:, :NL].set(params['fc2_b'])

    # Time-major token gather directly from the gate table (no (B,S,E) embedding
    # materialization, no big transpose, no in-kernel prologue matmul).
    gx_tok = tok_table[inputs.T]                        # (S, B, GP)
    topic = mov_table[movie_idx] + bias_fold            # (B, GP), time-invariant
    last_idx = last_word_indices.reshape(B, 1).astype(jnp.int32)

    out_pad = pl.pallas_call(
        gru_mlp_kernel,
        out_shape=jax.ShapeDtypeStruct((B, OUT_PAD), jnp.float32),
        grid=(1,),
        in_specs=[
            pl.BlockSpec((S, B, GP), lambda i: (0, 0, 0)),    # Gx (token part)
            pl.BlockSpec((B, GP), lambda i: (0, 0)),          # movie + folded biases
            pl.BlockSpec((HP, GP), lambda i: (0, 0)),         # W_hh fused (lane-padded)
            pl.BlockSpec((1, HP), lambda i: (0, 0)),          # b_hh[n]
            pl.BlockSpec((HP, F1P), lambda i: (0, 0)),        # fc1 W (padded)
            pl.BlockSpec((1, F1P), lambda i: (0, 0)),         # fc1 b
            pl.BlockSpec((F1P, OUT_PAD), lambda i: (0, 0)),   # fc2 W (padded)
            pl.BlockSpec((1, OUT_PAD), lambda i: (0, 0)),     # fc2 b (padded)
            pl.BlockSpec((B, 1), lambda i: (0, 0)),           # last_word_indices
        ],
        out_specs=pl.BlockSpec((B, OUT_PAD), lambda i: (0, 0)),
        compiler_params=pltpu.CompilerParams(
            dimension_semantics=("arbitrary",)),
    )(gx_tok, topic, whh_p, b_hn_p, fc1_w_p, fc1_b_p, fc2_w_p, fc2_b_p, last_idx)

    return out_pad[:, :NL]


# ---------------------------------------------------------------------------
# Pure-JAX reference (mirrors PyTorch semantics) for correctness checking
# ---------------------------------------------------------------------------
def _build_gru_input(inputs, movie_idx, params):
    emb = params['embedding'][inputs]                          # (B, S, E)
    B, S, E = emb.shape
    movie_oh = params['movie_to_onehot'][movie_idx]            # (B, E)
    movie_oh = movie_oh.reshape(B, 1, E).astype(jnp.float32)
    zeros = jnp.zeros((B, 1, E), jnp.float32)
    topics = jnp.concatenate([movie_oh, zeros], axis=2)        # (B, 1, 2E)
    topics = jnp.broadcast_to(topics, (B, S, 2 * E))
    x = jnp.concatenate([emb.astype(jnp.float32), topics], axis=2)  # (B, S, 3E)
    return jnp.transpose(x, (1, 0, 2))                         # (S, B, 3E)


def reference_forward(inputs, movie_idx, last_word_indices, params):
    x = _build_gru_input(inputs, movie_idx, params)            # (S, B, Din)
    S, B, _ = x.shape
    H = params['w_hh'].shape[-1]
    wih, whh = params['w_ih'], params['w_hh']
    bih, bhh = params['b_ih'], params['b_hh']

    def step(h, xt):
        r = jax.nn.sigmoid(xt @ wih[0] + bih[0] + h @ whh[0] + bhh[0])
        z = jax.nn.sigmoid(xt @ wih[1] + bih[1] + h @ whh[1] + bhh[1])
        n = jnp.tanh(xt @ wih[2] + bih[2] + r * (h @ whh[2] + bhh[2]))
        h_new = (1.0 - z) * n + z * h
        return h_new, h_new

    h0 = jnp.zeros((B, H), jnp.float32)
    _, states = lax.scan(step, h0, x)                          # (S, B, H)
    states = jnp.transpose(states, (1, 0, 2))                  # (B, S, H)
    tmp = states[jnp.arange(B), last_word_indices]             # (B, H)
    hid = jnp.maximum(tmp @ params['fc1_w'] + params['fc1_b'], 0.0)
    return hid @ params['fc2_w'] + params['fc2_b']


# ---------------------------------------------------------------------------
if __name__ == "__main__":
    key = jax.random.PRNGKey(0)
    B, S, E, H, V, M = 8, 8, 16, 32, 20, 4        # batch, seq, embed, hidden, vocab, #movies
    F1, NL = 128, 5                               # fc1 width, num labels
    Din = 3 * E                                   # GRU input size = 3 * embed_dim

    ks = jax.random.split(key, 12)
    params = {
        'embedding':       jax.random.normal(ks[0], (V, E), jnp.float32) * 0.1,
        'movie_to_onehot': jnp.eye(M, E, dtype=jnp.float32),   # onehot_dimension == embed_dim
        'w_ih':  jax.random.uniform(ks[1], (3, Din, H), jnp.float32, -0.1, 0.1),
        'w_hh':  jax.random.uniform(ks[2], (3, H, H), jnp.float32, -0.1, 0.1),
        'b_ih':  jax.random.uniform(ks[3], (3, 1, H), jnp.float32, -0.1, 0.1),
        'b_hh':  jax.random.uniform(ks[4], (3, 1, H), jnp.float32, -0.1, 0.1),
        'fc1_w': jax.random.uniform(ks[5], (H, F1), jnp.float32, -0.1, 0.1),
        'fc1_b': jax.random.uniform(ks[6], (1, F1), jnp.float32, -0.1, 0.1),
        'fc2_w': jax.random.uniform(ks[7], (F1, NL), jnp.float32, -0.1, 0.1),
        'fc2_b': jax.random.uniform(ks[8], (1, NL), jnp.float32, -0.1, 0.1),
    }

    inputs = jax.random.randint(ks[9], (B, S), 0, V)
    movie_idx = jax.random.randint(ks[10], (B,), 0, M)
    last_word_indices = jax.random.randint(ks[11], (B,), 0, S)

    out = classification_forward(inputs, movie_idx, last_word_indices, params)
    out = jax.block_until_ready(out)

    ref = reference_forward(inputs, movie_idx, last_word_indices, params)
    np.testing.assert_allclose(np.asarray(out), np.asarray(ref), atol=1e-4, rtol=1e-4)

    print("KERNEL_OK")
</pallas_src>

<mosaic_0001>
module attributes {stable_mosaic.version = 11 : i64} {
  func.func @gru_mlp_kernel(%arg0: i32, %arg1: memref<8x8x384xf32, #tpu.memory_space<vmem>>, %arg2: memref<8x384xf32, #tpu.memory_space<vmem>>, %arg3: memref<128x384xf32, #tpu.memory_space<vmem>>, %arg4: memref<1x128xf32, #tpu.memory_space<vmem>>, %arg5: memref<128x128xf32, #tpu.memory_space<vmem>>, %arg6: memref<1x128xf32, #tpu.memory_space<vmem>>, %arg7: memref<128x128xf32, #tpu.memory_space<vmem>>, %arg8: memref<1x128xf32, #tpu.memory_space<vmem>>, %arg9: memref<8x1xi32, #tpu.memory_space<vmem>>, %arg10: memref<8x128xf32, #tpu.memory_space<vmem>>) attributes {dimension_semantics = [#tpu.dimension_semantics<arbitrary>], iteration_bounds = array<i64: 1>, scalar_prefetch = 0 : i64, scratch_operands = 0 : i64, tpu.core_type = #tpu.core_type<tc>, window_params = [{pipeline_mode = #tpu.pipeline_mode<synchronous>, transform_indices = @transform_0, window_bounds = array<i64: 8, 8, 384>}, {pipeline_mode = #tpu.pipeline_mode<synchronous>, transform_indices = @transform_1, window_bounds = array<i64: 8, 384>}, {pipeline_mode = #tpu.pipeline_mode<synchronous>, transform_indices = @transform_2, window_bounds = array<i64: 128, 384>}, {pipeline_mode = #tpu.pipeline_mode<synchronous>, transform_indices = @transform_3, window_bounds = array<i64: 1, 128>}, {pipeline_mode = #tpu.pipeline_mode<synchronous>, transform_indices = @transform_4, window_bounds = array<i64: 128, 128>}, {pipeline_mode = #tpu.pipeline_mode<synchronous>, transform_indices = @transform_5, window_bounds = array<i64: 1, 128>}, {pipeline_mode = #tpu.pipeline_mode<synchronous>, transform_indices = @transform_6, window_bounds = array<i64: 128, 128>}, {pipeline_mode = #tpu.pipeline_mode<synchronous>, transform_indices = @transform_7, window_bounds = array<i64: 1, 128>}, {pipeline_mode = #tpu.pipeline_mode<synchronous>, transform_indices = @transform_8, window_bounds = array<i64: 8, 1>}, {pipeline_mode = #tpu.pipeline_mode<synchronous>, transform_indices = @transform_9, window_bounds = array<i64: 8, 128>}]} {
    %c0 = arith.constant 0 : index
    %c0_0 = arith.constant 0 : index
    %c0_1 = arith.constant 0 : index
    %0 = vector.load %arg1[%c0, %c0_0, %c0_1] : memref<8x8x384xf32, #tpu.memory_space<vmem>>, vector<8x8x384xf32>
    %c0_2 = arith.constant 0 : index
    %c0_3 = arith.constant 0 : index
    %1 = vector.load %arg2[%c0_2, %c0_3] : memref<8x384xf32, #tpu.memory_space<vmem>>, vector<8x384xf32>
    %2 = vector.shape_cast %1 : vector<8x384xf32> to vector<1x8x384xf32>
    %3 = vector.broadcast %2 : vector<1x8x384xf32> to vector<8x8x384xf32>
    %4 = arith.addf %0, %3 : vector<8x8x384xf32>
    %c0_4 = arith.constant 0 : index
    %c0_5 = arith.constant 0 : index
    %5 = vector.load %arg4[%c0_4, %c0_5] : memref<1x128xf32, #tpu.memory_space<vmem>>, vector<1x128xf32>
    %6 = vector.shape_cast %5 : vector<1x128xf32> to vector<1x128xf32>
    %7 = vector.broadcast %6 : vector<1x128xf32> to vector<8x128xf32>
    %c0_6 = arith.constant 0 : index
    %c0_7 = arith.constant 0 : index
    %8 = vector.load %arg9[%c0_6, %c0_7] : memref<8x1xi32, #tpu.memory_space<vmem>>, vector<8x1xi32>
    %9 = vector.shape_cast %8 : vector<8x1xi32> to vector<8x1xi32>
    %10 = vector.broadcast %9 : vector<8x1xi32> to vector<8x128xi32>
    %cst = arith.constant 0.000000e+00 : f32
    %11 = vector.broadcast %cst : f32 to vector<8x128xf32>
    %cst_8 = arith.constant 0.000000e+00 : f32
    %12 = vector.broadcast %cst_8 : f32 to vector<8x128xf32>
    %13 = vector.extract_strided_slice %4 {offsets = [0, 0, 0], sizes = [1, 8, 384], strides = [1, 1, 1]} : vector<8x8x384xf32> to vector<1x8x384xf32>
    %14 = vector.shape_cast %13 : vector<1x8x384xf32> to vector<8x384xf32>
    %c0_9 = arith.constant 0 : index
    %c0_10 = arith.constant 0 : index
    %15 = vector.load %arg3[%c0_9, %c0_10] : memref<128x384xf32, #tpu.memory_space<vmem>>, vector<128x384xf32>
    %cst_11 = arith.constant dense<0.000000e+00> : vector<8x384xf32>
    %16 = tpu.matmul %11, %15, %cst_11 {dimension_numbers = #tpu.dot_dimension_numbers<[1], [0], [0], [1], [0, 0, 1, 1], [], []>} : vector<8x128xf32>, vector<128x384xf32>, vector<8x384xf32> -> vector<8x384xf32>
    %17 = vector.extract_strided_slice %14 {offsets = [0, 0], sizes = [8, 128], strides = [1, 1]} : vector<8x384xf32> to vector<8x128xf32>
    %18 = vector.extract_strided_slice %16 {offsets = [0, 0], sizes = [8, 128], strides = [1, 1]} : vector<8x384xf32> to vector<8x128xf32>
    %19 = arith.addf %17, %18 : vector<8x128xf32>
    %20 = arith.negf %19 : vector<8x128xf32>
    %21 = math.exp %20 : vector<8x128xf32>
    %cst_12 = arith.constant 1.000000e+00 : f32
    %22 = vector.broadcast %cst_12 : f32 to vector<8x128xf32>
    %23 = arith.addf %22, %21 : vector<8x128xf32>
    %24 = arith.divf %22, %23 : vector<8x128xf32>
    %25 = vector.extract_strided_slice %14 {offsets = [0, 128], sizes = [8, 128], strides = [1, 1]} : vector<8x384xf32> to vector<8x128xf32>
    %26 = vector.extract_strided_slice %16 {offsets = [0, 128], sizes = [8, 128], strides = [1, 1]} : vector<8x384xf32> to vector<8x128xf32>
    %27 = arith.addf %25, %26 : vector<8x128xf32>
    %28 = arith.negf %27 : vector<8x128xf32>
    %29 = math.exp %28 : vector<8x128xf32>
    %cst_13 = arith.constant 1.000000e+00 : f32
    %30 = vector.broadcast %cst_13 : f32 to vector<8x128xf32>
    %31 = arith.addf %30, %29 : vector<8x128xf32>
    %32 = arith.divf %30, %31 : vector<8x128xf32>
    %33 = vector.extract_strided_slice %14 {offsets = [0, 256], sizes = [8, 128], strides = [1, 1]} : vector<8x384xf32> to vector<8x128xf32>
    %34 = vector.extract_strided_slice %16 {offsets = [0, 256], sizes = [8, 128], strides = [1, 1]} : vector<8x384xf32> to vector<8x128xf32>
    %35 = arith.addf %34, %7 : vector<8x128xf32>
    %36 = arith.mulf %24, %35 : vector<8x128xf32>
    %37 = arith.addf %33, %36 : vector<8x128xf32>
    %38 = math.tanh %37 : vector<8x128xf32>
    %cst_14 = arith.constant 1.000000e+00 : f32
    %39 = vector.broadcast %cst_14 : f32 to vector<8x128xf32>
    %40 = arith.subf %39, %32 : vector<8x128xf32>
    %41 = arith.mulf %40, %38 : vector<8x128xf32>
    %42 = arith.mulf %32, %11 : vector<8x128xf32>
    %43 = arith.addf %41, %42 : vector<8x128xf32>
    %c0_i32 = arith.constant 0 : i32
    %44 = vector.broadcast %c0_i32 : i32 to vector<8x128xi32>
    %45 = arith.cmpi eq, %10, %44 : vector<8x128xi32>
    %46 = arith.select %45, %43, %12 : vector<8x128xi1>, vector<8x128xf32>
    %47 = vector.extract_strided_slice %4 {offsets = [1, 0, 0], sizes = [1, 8, 384], strides = [1, 1, 1]} : vector<8x8x384xf32> to vector<1x8x384xf32>
    %48 = vector.shape_cast %47 : vector<1x8x384xf32> to vector<8x384xf32>
    %c0_15 = arith.constant 0 : index
    %c0_16 = arith.constant 0 : index
    %49 = vector.load %arg3[%c0_15, %c0_16] : memref<128x384xf32, #tpu.memory_space<vmem>>, vector<128x384xf32>
    %cst_17 = arith.constant dense<0.000000e+00> : vector<8x384xf32>
    %50 = tpu.matmul %43, %49, %cst_17 {dimension_numbers = #tpu.dot_dimension_numbers<[1], [0], [0], [1], [0, 0, 1, 1], [], []>} : vector<8x128xf32>, vector<128x384xf32>, vector<8x384xf32> -> vector<8x384xf32>
    %51 = vector.extract_strided_slice %48 {offsets = [0, 0], sizes = [8, 128], strides = [1, 1]} : vector<8x384xf32> to vector<8x128xf32>
    %52 = vector.extract_strided_slice %50 {offsets = [0, 0], sizes = [8, 128], strides = [1, 1]} : vector<8x384xf32> to vector<8x128xf32>
    %53 = arith.addf %51, %52 : vector<8x128xf32>
    %54 = arith.negf %53 : vector<8x128xf32>
    %55 = math.exp %54 : vector<8x128xf32>
    %cst_18 = arith.constant 1.000000e+00 : f32
    %56 = vector.broadcast %cst_18 : f32 to vector<8x128xf32>
    %57 = arith.addf %56, %55 : vector<8x128xf32>
    %58 = arith.divf %56, %57 : vector<8x128xf32>
    %59 = vector.extract_strided_slice %48 {offsets = [0, 128], sizes = [8, 128], strides = [1, 1]} : vector<8x384xf32> to vector<8x128xf32>
    %60 = vector.extract_strided_slice %50 {offsets = [0, 128], sizes = [8, 128], strides = [1, 1]} : vector<8x384xf32> to vector<8x128xf32>
    %61 = arith.addf %59, %60 : vector<8x128xf32>
    %62 = arith.negf %61 : vector<8x128xf32>
    %63 = math.exp %62 : vector<8x128xf32>
    %cst_19 = arith.constant 1.000000e+00 : f32
    %64 = vector.broadcast %cst_19 : f32 to vector<8x128xf32>
    %65 = arith.addf %64, %63 : vector<8x128xf32>
    %66 = arith.divf %64, %65 : vector<8x128xf32>
    %67 = vector.extract_strided_slice %48 {offsets = [0, 256], sizes = [8, 128], strides = [1, 1]} : vector<8x384xf32> to vector<8x128xf32>
    %68 = vector.extract_strided_slice %50 {offsets = [0, 256], sizes = [8, 128], strides = [1, 1]} : vector<8x384xf32> to vector<8x128xf32>
    %69 = arith.addf %68, %7 : vector<8x128xf32>
    %70 = arith.mulf %58, %69 : vector<8x128xf32>
    %71 = arith.addf %67, %70 : vector<8x128xf32>
    %72 = math.tanh %71 : vector<8x128xf32>
    %cst_20 = arith.constant 1.000000e+00 : f32
    %73 = vector.broadcast %cst_20 : f32 to vector<8x128xf32>
    %74 = arith.subf %73, %66 : vector<8x128xf32>
    %75 = arith.mulf %74, %72 : vector<8x128xf32>
    %76 = arith.mulf %66, %43 : vector<8x128xf32>
    %77 = arith.addf %75, %76 : vector<8x128xf32>
    %c1_i32 = arith.constant 1 : i32
    %78 = vector.broadcast %c1_i32 : i32 to vector<8x128xi32>
    %79 = arith.cmpi eq, %10, %78 : vector<8x128xi32>
    %80 = arith.select %79, %77, %46 : vector<8x128xi1>, vector<8x128xf32>
    %81 = vector.extract_strided_slice %4 {offsets = [2, 0, 0], sizes = [1, 8, 384], strides = [1, 1, 1]} : vector<8x8x384xf32> to vector<1x8x384xf32>
    %82 = vector.shape_cast %81 : vector<1x8x384xf32> to vector<8x384xf32>
    %c0_21 = arith.constant 0 : index
    %c0_22 = arith.constant 0 : index
    %83 = vector.load %arg3[%c0_21, %c0_22] : memref<128x384xf32, #tpu.memory_space<vmem>>, vector<128x384xf32>
    %cst_23 = arith.constant dense<0.000000e+00> : vector<8x384xf32>
    %84 = tpu.matmul %77, %83, %cst_23 {dimension_numbers = #tpu.dot_dimension_numbers<[1], [0], [0], [1], [0, 0, 1, 1], [], []>} : vector<8x128xf32>, vector<128x384xf32>, vector<8x384xf32> -> vector<8x384xf32>
    %85 = vector.extract_strided_slice %82 {offsets = [0, 0], sizes = [8, 128], strides = [1, 1]} : vector<8x384xf32> to vector<8x128xf32>
    %86 = vector.extract_strided_slice %84 {offsets = [0, 0], sizes = [8, 128], strides = [1, 1]} : vector<8x384xf32> to vector<8x128xf32>
    %87 = arith.addf %85, %86 : vector<8x128xf32>
    %88 = arith.negf %87 : vector<8x128xf32>
    %89 = math.exp %88 : vector<8x128xf32>
    %cst_24 = arith.constant 1.000000e+00 : f32
    %90 = vector.broadcast %cst_24 : f32 to vector<8x128xf32>
    %91 = arith.addf %90, %89 : vector<8x128xf32>
    %92 = arith.divf %90, %91 : vector<8x128xf32>
    %93 = vector.extract_strided_slice %82 {offsets = [0, 128], sizes = [8, 128], strides = [1, 1]} : vector<8x384xf32> to vector<8x128xf32>
    %94 = vector.extract_strided_slice %84 {offsets = [0, 128], sizes = [8, 128], strides = [1, 1]} : vector<8x384xf32> to vector<8x128xf32>
    %95 = arith.addf %93, %94 : vector<8x128xf32>
    %96 = arith.negf %95 : vector<8x128xf32>
    %97 = math.exp %96 : vector<8x128xf32>
    %cst_25 = arith.constant 1.000000e+00 : f32
    %98 = vector.broadcast %cst_25 : f32 to vector<8x128xf32>
    %99 = arith.addf %98, %97 : vector<8x128xf32>
    %100 = arith.divf %98, %99 : vector<8x128xf32>
    %101 = vector.extract_strided_slice %82 {offsets = [0, 256], sizes = [8, 128], strides = [1, 1]} : vector<8x384xf32> to vector<8x128xf32>
    %102 = vector.extract_strided_slice %84 {offsets = [0, 256], sizes = [8, 128], strides = [1, 1]} : vector<8x384xf32> to vector<8x128xf32>
    %103 = arith.addf %102, %7 : vector<8x128xf32>
    %104 = arith.mulf %92, %103 : vector<8x128xf32>
    %105 = arith.addf %101, %104 : vector<8x128xf32>
    %106 = math.tanh %105 : vector<8x128xf32>
    %cst_26 = arith.constant 1.000000e+00 : f32
    %107 = vector.broadcast %cst_26 : f32 to vector<8x128xf32>
    %108 = arith.subf %107, %100 : vector<8x128xf32>
    %109 = arith.mulf %108, %106 : vector<8x128xf32>
    %110 = arith.mulf %100, %77 : vector<8x128xf32>
    %111 = arith.addf %109, %110 : vector<8x128xf32>
    %c2_i32 = arith.constant 2 : i32
    %112 = vector.broadcast %c2_i32 : i32 to vector<8x128xi32>
    %113 = arith.cmpi eq, %10, %112 : vector<8x128xi32>
    %114 = arith.select %113, %111, %80 : vector<8x128xi1>, vector<8x128xf32>
    %115 = vector.extract_strided_slice %4 {offsets = [3, 0, 0], sizes = [1, 8, 384], strides = [1, 1, 1]} : vector<8x8x384xf32> to vector<1x8x384xf32>
    %116 = vector.shape_cast %115 : vector<1x8x384xf32> to vector<8x384xf32>
    %c0_27 = arith.constant 0 : index
    %c0_28 = arith.constant 0 : index
    %117 = vector.load %arg3[%c0_27, %c0_28] : memref<128x384xf32, #tpu.memory_space<vmem>>, vector<128x384xf32>
    %cst_29 = arith.constant dense<0.000000e+00> : vector<8x384xf32>
    %118 = tpu.matmul %111, %117, %cst_29 {dimension_numbers = #tpu.dot_dimension_numbers<[1], [0], [0], [1], [0, 0, 1, 1], [], []>} : vector<8x128xf32>, vector<128x384xf32>, vector<8x384xf32> -> vector<8x384xf32>
    %119 = vector.extract_strided_slice %116 {offsets = [0, 0], sizes = [8, 128], strides = [1, 1]} : vector<8x384xf32> to vector<8x128xf32>
    %120 = vector.extract_strided_slice %118 {offsets = [0, 0], sizes = [8, 128], strides = [1, 1]} : vector<8x384xf32> to vector<8x128xf32>
    %121 = arith.addf %119, %120 : vector<8x128xf32>
    %122 = arith.negf %121 : vector<8x128xf32>
    %123 = math.exp %122 : vector<8x128xf32>
    %cst_30 = arith.constant 1.000000e+00 : f32
    %124 = vector.broadcast %cst_30 : f32 to vector<8x128xf32>
    %125 = arith.addf %124, %123 : vector<8x128xf32>
    %126 = arith.divf %124, %125 : vector<8x128xf32>
    %127 = vector.extract_strided_slice %116 {offsets = [0, 128], sizes = [8, 128], strides = [1, 1]} : vector<8x384xf32> to vector<8x128xf32>
    %128 = vector.extract_strided_slice %118 {offsets = [0, 128], sizes = [8, 128], strides = [1, 1]} : vector<8x384xf32> to vector<8x128xf32>
    %129 = arith.addf %127, %128 : vector<8x128xf32>
    %130 = arith.negf %129 : vector<8x128xf32>
    %131 = math.exp %130 : vector<8x128xf32>
    %cst_31 = arith.constant 1.000000e+00 : f32
    %132 = vector.broadcast %cst_31 : f32 to vector<8x128xf32>
    %133 = arith.addf %132, %131 : vector<8x128xf32>
    %134 = arith.divf %132, %133 : vector<8x128xf32>
    %135 = vector.extract_strided_slice %116 {offsets = [0, 256], sizes = [8, 128], strides = [1, 1]} : vector<8x384xf32> to vector<8x128xf32>
    %136 = vector.extract_strided_slice %118 {offsets = [0, 256], sizes = [8, 128], strides = [1, 1]} : vector<8x384xf32> to vector<8x128xf32>
    %137 = arith.addf %136, %7 : vector<8x128xf32>
    %138 = arith.mulf %126, %137 : vector<8x128xf32>
    %139 = arith.addf %135, %138 : vector<8x128xf32>
    %140 = math.tanh %139 : vector<8x128xf32>
    %cst_32 = arith.constant 1.000000e+00 : f32
    %141 = vector.broadcast %cst_32 : f32 to vector<8x128xf32>
    %142 = arith.subf %141, %134 : vector<8x128xf32>
    %143 = arith.mulf %142, %140 : vector<8x128xf32>
    %144 = arith.mulf %134, %111 : vector<8x128xf32>
    %145 = arith.addf %143, %144 : vector<8x128xf32>
    %c3_i32 = arith.constant 3 : i32
    %146 = vector.broadcast %c3_i32 : i32 to vector<8x128xi32>
    %147 = arith.cmpi eq, %10, %146 : vector<8x128xi32>
    %148 = arith.select %147, %145, %114 : vector<8x128xi1>, vector<8x128xf32>
    %149 = vector.extract_strided_slice %4 {offsets = [4, 0, 0], sizes = [1, 8, 384], strides = [1, 1, 1]} : vector<8x8x384xf32> to vector<1x8x384xf32>
    %150 = vector.shape_cast %149 : vector<1x8x384xf32> to vector<8x384xf32>
    %c0_33 = arith.constant 0 : index
    %c0_34 = arith.constant 0 : index
    %151 = vector.load %arg3[%c0_33, %c0_34] : memref<128x384xf32, #tpu.memory_space<vmem>>, vector<128x384xf32>
    %cst_35 = arith.constant dense<0.000000e+00> : vector<8x384xf32>
    %152 = tpu.matmul %145, %151, %cst_35 {dimension_numbers = #tpu.dot_dimension_numbers<[1], [0], [0], [1], [0, 0, 1, 1], [], []>} : vector<8x128xf32>, vector<128x384xf32>, vector<8x384xf32> -> vector<8x384xf32>
    %153 = vector.extract_strided_slice %150 {offsets = [0, 0], sizes = [8, 128], strides = [1, 1]} : vector<8x384xf32> to vector<8x128xf32>
    %154 = vector.extract_strided_slice %152 {offsets = [0, 0], sizes = [8, 128], strides = [1, 1]} : vector<8x384xf32> to vector<8x128xf32>
    %155 = arith.addf %153, %154 : vector<8x128xf32>
    %156 = arith.negf %155 : vector<8x128xf32>
    %157 = math.exp %156 : vector<8x128xf32>
    %cst_36 = arith.constant 1.000000e+00 : f32
    %158 = vector.broadcast %cst_36 : f32 to vector<8x128xf32>
    %159 = arith.addf %158, %157 : vector<8x128xf32>
    %160 = arith.divf %158, %159 : vector<8x128xf32>
    %161 = vector.extract_strided_slice %150 {offsets = [0, 128], sizes = [8, 128], strides = [1, 1]} : vector<8x384xf32> to vector<8x128xf32>
    %162 = vector.extract_strided_slice %152 {offsets = [0, 128], sizes = [8, 128], strides = [1, 1]} : vector<8x384xf32> to vector<8x128xf32>
    %163 = arith.addf %161, %162 : vector<8x128xf32>
    %164 = arith.negf %163 : vector<8x128xf32>
    %165 = math.exp %164 : vector<8x128xf32>
    %cst_37 = arith.constant 1.000000e+00 : f32
    %166 = vector.broadcast %cst_37 : f32 to vector<8x128xf32>
    %167 = arith.addf %166, %165 : vector<8x128xf32>
    %168 = arith.divf %166, %167 : vector<8x128xf32>
    %169 = vector.extract_strided_slice %150 {offsets = [0, 256], sizes = [8, 128], strides = [1, 1]} : vector<8x384xf32> to vector<8x128xf32>
    %170 = vector.extract_strided_slice %152 {offsets = [0, 256], sizes = [8, 128], strides = [1, 1]} : vector<8x384xf32> to vector<8x128xf32>
    %171 = arith.addf %170, %7 : vector<8x128xf32>
    %172 = arith.mulf %160, %171 : vector<8x128xf32>
    %173 = arith.addf %169, %172 : vector<8x128xf32>
    %174 = math.tanh %173 : vector<8x128xf32>
    %cst_38 = arith.constant 1.000000e+00 : f32
    %175 = vector.broadcast %cst_38 : f32 to vector<8x128xf32>
    %176 = arith.subf %175, %168 : vector<8x128xf32>
    %177 = arith.mulf %176, %174 : vector<8x128xf32>
    %178 = arith.mulf %168, %145 : vector<8x128xf32>
    %179 = arith.addf %177, %178 : vector<8x128xf32>
    %c4_i32 = arith.constant 4 : i32
    %180 = vector.broadcast %c4_i32 : i32 to vector<8x128xi32>
    %181 = arith.cmpi eq, %10, %180 : vector<8x128xi32>
    %182 = arith.select %181, %179, %148 : vector<8x128xi1>, vector<8x128xf32>
    %183 = vector.extract_strided_slice %4 {offsets = [5, 0, 0], sizes = [1, 8, 384], strides = [1, 1, 1]} : vector<8x8x384xf32> to vector<1x8x384xf32>
    %184 = vector.shape_cast %183 : vector<1x8x384xf32> to vector<8x384xf32>
    %c0_39 = arith.constant 0 : index
    %c0_40 = arith.constant 0 : index
    %185 = vector.load %arg3[%c0_39, %c0_40] : memref<128x384xf32, #tpu.memory_space<vmem>>, vector<128x384xf32>
    %cst_41 = arith.constant dense<0.000000e+00> : vector<8x384xf32>
    %186 = tpu.matmul %179, %185, %cst_41 {dimension_numbers = #tpu.dot_dimension_numbers<[1], [0], [0], [1], [0, 0, 1, 1], [], []>} : vector<8x128xf32>, vector<128x384xf32>, vector<8x384xf32> -> vector<8x384xf32>
    %187 = vector.extract_strided_slice %184 {offsets = [0, 0], sizes = [8, 128], strides = [1, 1]} : vector<8x384xf32> to vector<8x128xf32>
    %188 = vector.extract_strided_slice %186 {offsets = [0, 0], sizes = [8, 128], strides = [1, 1]} : vector<8x384xf32> to vector<8x128xf32>
    %189 = arith.addf %187, %188 : vector<8x128xf32>
    %190 = arith.negf %189 : vector<8x128xf32>
    %191 = math.exp %190 : vector<8x128xf32>
    %cst_42 = arith.constant 1.000000e+00 : f32
    %192 = vector.broadcast %cst_42 : f32 to vector<8x128xf32>
    %193 = arith.addf %192, %191 : vector<8x128xf32>
    %194 = arith.divf %192, %193 : vector<8x128xf32>
    %195 = vector.extract_strided_slice %184 {offsets = [0, 128], sizes = [8, 128], strides = [1, 1]} : vector<8x384xf32> to vector<8x128xf32>
    %196 = vector.extract_strided_slice %186 {offsets = [0, 128], sizes = [8, 128], strides = [1, 1]} : vector<8x384xf32> to vector<8x128xf32>
    %197 = arith.addf %195, %196 : vector<8x128xf32>
    %198 = arith.negf %197 : vector<8x128xf32>
    %199 = math.exp %198 : vector<8x128xf32>
    %cst_43 = arith.constant 1.000000e+00 : f32
    %200 = vector.broadcast %cst_43 : f32 to vector<8x128xf32>
    %201 = arith.addf %200, %199 : vector<8x128xf32>
    %202 = arith.divf %200, %201 : vector<8x128xf32>
    %203 = vector.extract_strided_slice %184 {offsets = [0, 256], sizes = [8, 128], strides = [1, 1]} : vector<8x384xf32> to vector<8x128xf32>
    %204 = vector.extract_strided_slice %186 {offsets = [0, 256], sizes = [8, 128], strides = [1, 1]} : vector<8x384xf32> to vector<8x128xf32>
    %205 = arith.addf %204, %7 : vector<8x128xf32>
    %206 = arith.mulf %194, %205 : vector<8x128xf32>
    %207 = arith.addf %203, %206 : vector<8x128xf32>
    %208 = math.tanh %207 : vector<8x128xf32>
    %cst_44 = arith.constant 1.000000e+00 : f32
    %209 = vector.broadcast %cst_44 : f32 to vector<8x128xf32>
    %210 = arith.subf %209, %202 : vector<8x128xf32>
    %211 = arith.mulf %210, %208 : vector<8x128xf32>
    %212 = arith.mulf %202, %179 : vector<8x128xf32>
    %213 = arith.addf %211, %212 : vector<8x128xf32>
    %c5_i32 = arith.constant 5 : i32
    %214 = vector.broadcast %c5_i32 : i32 to vector<8x128xi32>
    %215 = arith.cmpi eq, %10, %214 : vector<8x128xi32>
    %216 = arith.select %215, %213, %182 : vector<8x128xi1>, vector<8x128xf32>
    %217 = vector.extract_strided_slice %4 {offsets = [6, 0, 0], sizes = [1, 8, 384], strides = [1, 1, 1]} : vector<8x8x384xf32> to vector<1x8x384xf32>
    %218 = vector.shape_cast %217 : vector<1x8x384xf32> to vector<8x384xf32>
    %c0_45 = arith.constant 0 : index
    %c0_46 = arith.constant 0 : index
    %219 = vector.load %arg3[%c0_45, %c0_46] : memref<128x384xf32, #tpu.memory_space<vmem>>, vector<128x384xf32>
    %cst_47 = arith.constant dense<0.000000e+00> : vector<8x384xf32>
    %220 = tpu.matmul %213, %219, %cst_47 {dimension_numbers = #tpu.dot_dimension_numbers<[1], [0], [0], [1], [0, 0, 1, 1], [], []>} : vector<8x128xf32>, vector<128x384xf32>, vector<8x384xf32> -> vector<8x384xf32>
    %221 = vector.extract_strided_slice %218 {offsets = [0, 0], sizes = [8, 128], strides = [1, 1]} : vector<8x384xf32> to vector<8x128xf32>
    %222 = vector.extract_strided_slice %220 {offsets = [0, 0], sizes = [8, 128], strides = [1, 1]} : vector<8x384xf32> to vector<8x128xf32>
    %223 = arith.addf %221, %222 : vector<8x128xf32>
    %224 = arith.negf %223 : vector<8x128xf32>
    %225 = math.exp %224 : vector<8x128xf32>
    %cst_48 = arith.constant 1.000000e+00 : f32
    %226 = vector.broadcast %cst_48 : f32 to vector<8x128xf32>
    %227 = arith.addf %226, %225 : vector<8x128xf32>
    %228 = arith.divf %226, %227 : vector<8x128xf32>
    %229 = vector.extract_strided_slice %218 {offsets = [0, 128], sizes = [8, 128], strides = [1, 1]} : vector<8x384xf32> to vector<8x128xf32>
    %230 = vector.extract_strided_slice %220 {offsets = [0, 128], sizes = [8, 128], strides = [1, 1]} : vector<8x384xf32> to vector<8x128xf32>
    %231 = arith.addf %229, %230 : vector<8x128xf32>
    %232 = arith.negf %231 : vector<8x128xf32>
    %233 = math.exp %232 : vector<8x128xf32>
    %cst_49 = arith.constant 1.000000e+00 : f32
    %234 = vector.broadcast %cst_49 : f32 to vector<8x128xf32>
    %235 = arith.addf %234, %233 : vector<8x128xf32>
    %236 = arith.divf %234, %235 : vector<8x128xf32>
    %237 = vector.extract_strided_slice %218 {offsets = [0, 256], sizes = [8, 128], strides = [1, 1]} : vector<8x384xf32> to vector<8x128xf32>
    %238 = vector.extract_strided_slice %220 {offsets = [0, 256], sizes = [8, 128], strides = [1, 1]} : vector<8x384xf32> to vector<8x128xf32>
    %239 = arith.addf %238, %7 : vector<8x128xf32>
    %240 = arith.mulf %228, %239 : vector<8x128xf32>
    %241 = arith.addf %237, %240 : vector<8x128xf32>
    %242 = math.tanh %241 : vector<8x128xf32>
    %cst_50 = arith.constant 1.000000e+00 : f32
    %243 = vector.broadcast %cst_50 : f32 to vector<8x128xf32>
    %244 = arith.subf %243, %236 : vector<8x128xf32>
    %245 = arith.mulf %244, %242 : vector<8x128xf32>
    %246 = arith.mulf %236, %213 : vector<8x128xf32>
    %247 = arith.addf %245, %246 : vector<8x128xf32>
    %c6_i32 = arith.constant 6 : i32
    %248 = vector.broadcast %c6_i32 : i32 to vector<8x128xi32>
    %249 = arith.cmpi eq, %10, %248 : vector<8x128xi32>
    %250 = arith.select %249, %247, %216 : vector<8x128xi1>, vector<8x128xf32>
    %251 = vector.extract_strided_slice %4 {offsets = [7, 0, 0], sizes = [1, 8, 384], strides = [1, 1, 1]} : vector<8x8x384xf32> to vector<1x8x384xf32>
    %252 = vector.shape_cast %251 : vector<1x8x384xf32> to vector<8x384xf32>
    %c0_51 = arith.constant 0 : index
    %c0_52 = arith.constant 0 : index
    %253 = vector.load %arg3[%c0_51, %c0_52] : memref<128x384xf32, #tpu.memory_space<vmem>>, vector<128x384xf32>
    %cst_53 = arith.constant dense<0.000000e+00> : vector<8x384xf32>
    %254 = tpu.matmul %247, %253, %cst_53 {dimension_numbers = #tpu.dot_dimension_numbers<[1], [0], [0], [1], [0, 0, 1, 1], [], []>} : vector<8x128xf32>, vector<128x384xf32>, vector<8x384xf32> -> vector<8x384xf32>
    %255 = vector.extract_strided_slice %252 {offsets = [0, 0], sizes = [8, 128], strides = [1, 1]} : vector<8x384xf32> to vector<8x128xf32>
    %256 = vector.extract_strided_slice %254 {offsets = [0, 0], sizes = [8, 128], strides = [1, 1]} : vector<8x384xf32> to vector<8x128xf32>
    %257 = arith.addf %255, %256 : vector<8x128xf32>
    %258 = arith.negf %257 : vector<8x128xf32>
    %259 = math.exp %258 : vector<8x128xf32>
    %cst_54 = arith.constant 1.000000e+00 : f32
    %260 = vector.broadcast %cst_54 : f32 to vector<8x128xf32>
    %261 = arith.addf %260, %259 : vector<8x128xf32>
    %262 = arith.divf %260, %261 : vector<8x128xf32>
    %263 = vector.extract_strided_slice %252 {offsets = [0, 128], sizes = [8, 128], strides = [1, 1]} : vector<8x384xf32> to vector<8x128xf32>
    %264 = vector.extract_strided_slice %254 {offsets = [0, 128], sizes = [8, 128], strides = [1, 1]} : vector<8x384xf32> to vector<8x128xf32>
    %265 = arith.addf %263, %264 : vector<8x128xf32>
    %266 = arith.negf %265 : vector<8x128xf32>
    %267 = math.exp %266 : vector<8x128xf32>
    %cst_55 = arith.constant 1.000000e+00 : f32
    %268 = vector.broadcast %cst_55 : f32 to vector<8x128xf32>
    %269 = arith.addf %268, %267 : vector<8x128xf32>
    %270 = arith.divf %268, %269 : vector<8x128xf32>
    %271 = vector.extract_strided_slice %252 {offsets = [0, 256], sizes = [8, 128], strides = [1, 1]} : vector<8x384xf32> to vector<8x128xf32>
    %272 = vector.extract_strided_slice %254 {offsets = [0, 256], sizes = [8, 128], strides = [1, 1]} : vector<8x384xf32> to vector<8x128xf32>
    %273 = arith.addf %272, %7 : vector<8x128xf32>
    %274 = arith.mulf %262, %273 : vector<8x128xf32>
    %275 = arith.addf %271, %274 : vector<8x128xf32>
    %276 = math.tanh %275 : vector<8x128xf32>
    %cst_56 = arith.constant 1.000000e+00 : f32
    %277 = vector.broadcast %cst_56 : f32 to vector<8x128xf32>
    %278 = arith.subf %277, %270 : vector<8x128xf32>
    %279 = arith.mulf %278, %276 : vector<8x128xf32>
    %280 = arith.mulf %270, %247 : vector<8x128xf32>
    %281 = arith.addf %279, %280 : vector<8x128xf32>
    %c7_i32 = arith.constant 7 : i32
    %282 = vector.broadcast %c7_i32 : i32 to vector<8x128xi32>
    %283 = arith.cmpi eq, %10, %282 : vector<8x128xi32>
    %284 = arith.select %283, %281, %250 : vector<8x128xi1>, vector<8x128xf32>
    %c0_57 = arith.constant 0 : index
    %c0_58 = arith.constant 0 : index
    %285 = vector.load %arg5[%c0_57, %c0_58] : memref<128x128xf32, #tpu.memory_space<vmem>>, vector<128x128xf32>
    %cst_59 = arith.constant dense<0.000000e+00> : vector<8x128xf32>
    %286 = tpu.matmul %284, %285, %cst_59 {dimension_numbers = #tpu.dot_dimension_numbers<[1], [0], [0], [1], [0, 0, 1, 1], [], []>} : vector<8x128xf32>, vector<128x128xf32>, vector<8x128xf32> -> vector<8x128xf32>
    %c0_60 = arith.constant 0 : index
    %c0_61 = arith.constant 0 : index
    %287 = vector.load %arg6[%c0_60, %c0_61] : memref<1x128xf32, #tpu.memory_space<vmem>>, vector<1x128xf32>
    %288 = vector.broadcast %287 : vector<1x128xf32> to vector<8x128xf32>
    %289 = arith.addf %286, %288 : vector<8x128xf32>
    %cst_62 = arith.constant 0.000000e+00 : f32
    %290 = vector.broadcast %cst_62 : f32 to vector<8x128xf32>
    %291 = arith.maximumf %289, %290 : vector<8x128xf32>
    %c0_63 = arith.constant 0 : index
    %c0_64 = arith.constant 0 : index
    %292 = vector.load %arg7[%c0_63, %c0_64] : memref<128x128xf32, #tpu.memory_space<vmem>>, vector<128x128xf32>
    %cst_65 = arith.constant dense<0.000000e+00> : vector<8x128xf32>
    %293 = tpu.matmul %291, %292, %cst_65 {dimension_numbers = #tpu.dot_dimension_numbers<[1], [0], [0], [1], [0, 0, 1, 1], [], []>} : vector<8x128xf32>, vector<128x128xf32>, vector<8x128xf32> -> vector<8x128xf32>
    %c0_66 = arith.constant 0 : index
    %c0_67 = arith.constant 0 : index
    %294 = vector.load %arg8[%c0_66, %c0_67] : memref<1x128xf32, #tpu.memory_space<vmem>>, vector<1x128xf32>
    %295 = vector.broadcast %294 : vector<1x128xf32> to vector<8x128xf32>
    %296 = arith.addf %293, %295 : vector<8x128xf32>
    %c0_68 = arith.constant 0 : index
    %c0_69 = arith.constant 0 : index
    %297 = vector.load %arg10[%c0_68, %c0_69] : memref<8x128xf32, #tpu.memory_space<vmem>>, vector<8x128xf32>
    tpu.vector_store %arg10[%c0_68, %c0_69], %296 {strides = array<i32>} : memref<8x128xf32, #tpu.memory_space<vmem>>, vector<8x128xf32>,
    return
  }
  func.func @transform_0(%arg0: i32) -> (i32, i32, i32) {
    %c0_i32 = arith.constant 0 : i32
    %c0_i32_0 = arith.constant 0 : i32
    %c0_i32_1 = arith.constant 0 : i32
    %c0_i32_2 = arith.constant 0 : i32
    return %c0_i32, %c0_i32_0, %c0_i32_1 : i32, i32, i32
  }
  func.func @transform_1(%arg0: i32) -> (i32, i32) {
    %c0_i32 = arith.constant 0 : i32
    %c0_i32_0 = arith.constant 0 : i32
    %c0_i32_1 = arith.constant 0 : i32
    return %c0_i32, %c0_i32_0 : i32, i32
  }
  func.func @transform_2(%arg0: i32) -> (i32, i32) {
    %c0_i32 = arith.constant 0 : i32
    %c0_i32_0 = arith.constant 0 : i32
    %c0_i32_1 = arith.constant 0 : i32
    return %c0_i32, %c0_i32_0 : i32, i32
  }
  func.func @transform_3(%arg0: i32) -> (i32, i32) {
    %c0_i32 = arith.constant 0 : i32
    %c0_i32_0 = arith.constant 0 : i32
    %c0_i32_1 = arith.constant 0 : i32
    return %c0_i32, %c0_i32_0 : i32, i32
  }
  func.func @transform_4(%arg0: i32) -> (i32, i32) {
    %c0_i32 = arith.constant 0 : i32
    %c0_i32_0 = arith.constant 0 : i32
    %c0_i32_1 = arith.constant 0 : i32
    return %c0_i32, %c0_i32_0 : i32, i32
  }
  func.func @transform_5(%arg0: i32) -> (i32, i32) {
    %c0_i32 = arith.constant 0 : i32
    %c0_i32_0 = arith.constant 0 : i32
    %c0_i32_1 = arith.constant 0 : i32
    return %c0_i32, %c0_i32_0 : i32, i32
  }
  func.func @transform_6(%arg0: i32) -> (i32, i32) {
    %c0_i32 = arith.constant 0 : i32
    %c0_i32_0 = arith.constant 0 : i32
    %c0_i32_1 = arith.constant 0 : i32
    return %c0_i32, %c0_i32_0 : i32, i32
  }
  func.func @transform_7(%arg0: i32) -> (i32, i32) {
    %c0_i32 = arith.constant 0 : i32
    %c0_i32_0 = arith.constant 0 : i32
    %c0_i32_1 = arith.constant 0 : i32
    return %c0_i32, %c0_i32_0 : i32, i32
  }
  func.func @transform_8(%arg0: i32) -> (i32, i32) {
    %c0_i32 = arith.constant 0 : i32
    %c0_i32_0 = arith.constant 0 : i32
    %c0_i32_1 = arith.constant 0 : i32
    return %c0_i32, %c0_i32_0 : i32, i32
  }
  func.func @transform_9(%arg0: i32) -> (i32, i32) {
    %c0_i32 = arith.constant 0 : i32
    %c0_i32_0 = arith.constant 0 : i32
    %c0_i32_1 = arith.constant 0 : i32
    return %c0_i32, %c0_i32_0 : i32, i32
  }
}

</mosaic_0001>

<bundles_post_ra>
// kernel: tpu_custom_call.1
= control target key start
LH: loop header
LB: loop body
LE: loop exit
PB: predicated region body
PF: predicated region fallthrough
CT: control target
= control target key end

     0   :  { %14 = vsyncpa [#allocation3], 0  ;;  %s3600_s0 = inlined_call_operand.hbm [shape: f32[8,8,384], index: 0, kind: input, shape index: {}]   ;;  %s3601_s1 = inlined_call_operand.hbm [shape: f32[8,384], index: 1, kind: input, shape index: {}]   ;;  %s3602_s2 = inlined_call_operand.hbm [shape: f32[128,384], index: 2, kind: input, shape index: {}]   ;;  %s3603_s3 = inlined_call_operand.vmem [shape: f32[1,128], index: 3, kind: input, shape index: {}]   ;;  %s3604_s4 = inlined_call_operand.hbm [shape: f32[128,128], index: 4, kind: input, shape index: {}]   ;;  %s3605_s5 = inlined_call_operand.vmem [shape: f32[1,128], index: 5, kind: input, shape index: {}]   ;;  %s3606_s6 = inlined_call_operand.hbm [shape: f32[128,128], index: 6, kind: input, shape index: {}]   ;;  %s3607_s7 = inlined_call_operand.vmem [shape: f32[1,128], index: 7, kind: input, shape index: {}]   ;;  %s3608_s8 = inlined_call_operand.vmem [shape: s32[8,1], index: 8, kind: input, shape index: {}]   ;;  %s3609_s9 = inlined_call_operand.hbm [shape: f32[8,128], index: 9, kind: output, shape index: {}]  }
   0x1   :  { %15 = vsyncpa [#allocation6], 0 }
   0x2   :  { %16 = vsyncpa [#allocation9], 0 }
   0x3   :  { %17 = vsyncpa [#allocation4], 0  ;;  %s3008_s30 = smov [#allocation5]   ;;  %s3009_s11 = smov [#allocation8]  }
   0x4   :  { %s36_s10 = sshll.u32 %s3008_s30, 4  ;;  %s59_s12 = sshll.u32 %s3009_s11, 4  ;;  %s37_s10 = int_to_ptr.vmem [resolvable:$true] %s36_s10  ;;  %s3072_s12 = int_to_ptr.vmem [resolvable:$true] %s59_s12 }
   0x5   :  { %s2868_s15 = scalar_lea.hbm %s3601_s1, 384 }
   0x6   :  { %p2869_p0 = scmp.ne.s32.totalorder %s3601_s1, %s2868_s15  ;;  %p2872_p1 = scmp.lt.u32.totalorder %s2868_s15, %s3601_s1 }
   0x8   :  { %p2874_p2 = pnand %p2872_p1, %p2869_p0 }
   0xa   :  { %2877 = shalt.err (!%p2874_p2)
}
   0xb   :  { %s2878_s20 = scalar_lea.vmem %s37_s10, 384  ;;  %p2883_p4 = scmp.lt.s32.totalorder %s37_s10, %s37_s10 }
   0xc   :  { %p2879_p3 = scmp.ne.s32.totalorder %s37_s10, %s2878_s20  ;;  %p2884_p5 = scmp.lt.s32.totalorder %s2878_s20, %s2878_s20 }
   0xe   :  { %p2885_p6 = por %p2884_p5, %p2883_p4 }
  0x10   :  { %p2886_p7 = pnand %p2885_p6, %p2879_p3 }
  0x12   :  { %2889 = shalt.err (!%p2886_p7)
}
  0x13   :  { %39 = dma.hbm_to_vmem [thread:$0]  %s3601_s1, 384, %s37_s10, [#allocation6]  }
  0x14   :  { %s2890_s25 = scalar_lea.hbm %s3604_s4, 2048 }
  0x15   :  { %p2891_p8 = scmp.ne.s32.totalorder %s3604_s4, %s2890_s25  ;;  %p2894_p9 = scmp.lt.u32.totalorder %s2890_s25, %s3604_s4 }
  0x17   :  { %p2896_p10 = pnand %p2894_p9, %p2891_p8 }
  0x19   :  { %2899 = shalt.err (!%p2896_p10)
}
  0x1a   :  { %s2900_s30 = scalar_lea.vmem %s3072_s12, 2048  ;;  %p2905_p12 = scmp.lt.s32.totalorder %s3072_s12, %s3072_s12 }
  0x1b   :  { %p2901_p11 = scmp.ne.s32.totalorder %s3072_s12, %s2900_s30  ;;  %p2906_p13 = scmp.lt.s32.totalorder %s2900_s30, %s2900_s30 }
  0x1d   :  { %p2907_p0 = por %p2906_p13, %p2905_p12 }
  0x1f   :  { %p2908_p1 = pnand %p2907_p0, %p2901_p11 }
  0x21   :  { %2911 = shalt.err (!%p2908_p1)
}
  0x22   :  { %s3010_s1 = smov 128   ;;  %s3011_s10 = smov 8  }
  0x23   :  { %65 = dma.hbm_to_vmem [thread:$0]  %s3604_s4, 2048, %s3072_s12, [#allocation9], %s3010_s1, %s3010_s1, %s3011_s10  }
  0x24   :  { %s3012_s14 = smov [#allocation2]   ;;  %s2912_s18 = scalar_lea.hbm %s3600_s0, 3072 }
  0x25   :  { %s23_s15 = sshll.u32 %s3012_s14, 4  ;;  %p2913_p2 = scmp.ne.s32.totalorder %s3600_s0, %s2912_s18  ;;  %s24_s15 = int_to_ptr.vmem [resolvable:$true] %s23_s15 }
  0x26   :  { %p2916_p3 = scmp.lt.u32.totalorder %s2912_s18, %s3600_s0 }
  0x28   :  { %p2918_p4 = pnand %p2916_p3, %p2913_p2 }
  0x2a   :  { %2921 = shalt.err (!%p2918_p4)
}
  0x2b   :  { %s2922_s23 = scalar_lea.vmem %s24_s15, 3072  ;;  %p2927_p6 = scmp.lt.s32.totalorder %s24_s15, %s24_s15 }
  0x2c   :  { %p2923_p5 = scmp.ne.s32.totalorder %s24_s15, %s2922_s23  ;;  %p2928_p7 = scmp.lt.s32.totalorder %s2922_s23, %s2922_s23 }
  0x2e   :  { %p2929_p8 = por %p2928_p7, %p2927_p6 }
  0x30   :  { %p2930_p9 = pnand %p2929_p8, %p2923_p5 }
  0x32   :  { %2933 = shalt.err (!%p2930_p9)
}
  0x33   :  { %s3013_s4 = smov 384   ;;  %s3014_s12 = smov 24  }
  0x34   :  { %29 = dma.hbm_to_vmem [thread:$0]  %s3600_s0, 3072, %s24_s15, [#allocation3], %s3013_s4, %s3013_s4, %s3014_s12  }
  0x35   :  { %s3015_s26 = smov [#allocation7]   ;;  %s3016_s28 = smov [#allocation10]  }
  0x36   :  { %s45_s27 = sshll.u32 %s3015_s26, 4  ;;  %s73_s29 = sshll.u32 %s3016_s28, 4  ;;  %s46_s27 = int_to_ptr.vmem [resolvable:$true] %s45_s27  ;;  %s74_s29 = int_to_ptr.vmem [resolvable:$true] %s73_s29 }
  0x37   :  { %s2934_s13 = scalar_lea.hbm %s3602_s2, 6144 }
  0x38   :  { %p2935_p10 = scmp.ne.s32.totalorder %s3602_s2, %s2934_s13  ;;  %p2938_p11 = scmp.lt.u32.totalorder %s2934_s13, %s3602_s2 }
  0x3a   :  { %p2940_p12 = pnand %p2938_p11, %p2935_p10 }
  0x3c   :  { %2943 = shalt.err (!%p2940_p12)
}
  0x3d   :  { %s2944_s0 = scalar_lea.vmem %s46_s27, 6144  ;;  %p2949_p0 = scmp.lt.s32.totalorder %s46_s27, %s46_s27 }
  0x3e   :  { %p2945_p13 = scmp.ne.s32.totalorder %s46_s27, %s2944_s0  ;;  %p2950_p1 = scmp.lt.s32.totalorder %s2944_s0, %s2944_s0 }
  0x40   :  { %p2951_p2 = por %p2950_p1, %p2949_p0 }
  0x42   :  { %p2952_p3 = pnand %p2951_p2, %p2945_p13 }
  0x44   :  { %2955 = shalt.err (!%p2952_p3)
}
  0x45   :  { %51 = dma.hbm_to_vmem [thread:$0]  %s3602_s2, 6144, %s46_s27, [#allocation6], %s3013_s4, %s3013_s4, %s3014_s12  }
  0x46   :  { %s2956_s22 = scalar_lea.hbm %s3606_s6, 2048 }
  0x47   :  { %p2957_p4 = scmp.ne.s32.totalorder %s3606_s6, %s2956_s22  ;;  %p2960_p5 = scmp.lt.u32.totalorder %s2956_s22, %s3606_s6 }
  0x49   :  { %p2962_p6 = pnand %p2960_p5, %p2957_p4 }
  0x4b   :  { %2965 = shalt.err (!%p2962_p6)
}
  0x4c   :  { %s2966_s28 = scalar_lea.vmem %s74_s29, 2048  ;;  %p2971_p8 = scmp.lt.s32.totalorder %s74_s29, %s74_s29 }
  0x4d   :  { %p2967_p7 = scmp.ne.s32.totalorder %s74_s29, %s2966_s28  ;;  %p2972_p9 = scmp.lt.s32.totalorder %s2966_s28, %s2966_s28 }
  0x4f   :  { %p2973_p10 = por %p2972_p9, %p2971_p8 }
  0x51   :  { %p2974_p11 = pnand %p2973_p10, %p2967_p7 }
  0x53   :  { %2977 = shalt.err (!%p2974_p11)
}
  0x54   :  { %79 = dma.hbm_to_vmem [thread:$0]  %s3606_s6, 2048, %s74_s29, [#allocation9], %s3010_s1, %s3010_s1, %s3011_s10  }
  0x55   :  { %3000 = dma.done.wait [#allocation3], 3072  }
  0x56   :  { %3001 = vsyncadd [#allocation3], 4294964224 }
  0x57   :  { %3002 = dma.done.wait [#allocation6], 6528  }
  0x58   :  { %3003 = vsyncadd [#allocation6], 4294960768 }
  0x59   :  { %3004 = dma.done.wait [#allocation9], 4096  }
  0x5a   :  { %3005 = vsyncadd [#allocation9], 4294963200  ;;  %v3017_v0 = vmov 0.0|0.0   ;;  %v3018_v1 = vmov 0.0   ;;  %vm3019_vm0 = vmmov 0   ;;  %v3020_v2 = vmov 0  }
  0x5b   :  { %2305 = vmatprep.subr.bf16.mxu1 %v3017_v0  ;;  %273 = vmatprep.mubr.f32.mxu0 %v3018_v1  ;;  %v162_v3 = vld [vmem:[#allocation7 + $0x8] sm:$0xff]  ;;  %v165_v4 = vld [vmem:[#allocation7 + $0x20] sm:$0xff]  ;;  %v164_v7 = vld [vmem:[#allocation7 + $0x18] sm:$0xff]  ;;  %s3021_s13 = smov [#allocation11]  }
  0x5c   :  { %1955 = vmatprep.mubr.msk.f32.mxu1 %vm3019_vm0, %v3018_v1  ;;  %2783 = vset.pattern.permute.xlu0 %v3020_v2  ;;  %v161_v5 = vld [vmem:[#allocation7] sm:$0xff]  ;;  %v3149_v6 = vpack.c.bf16 %v165_v4, %v162_v3  ;;  %v168_v8 = vld [vmem:[#allocation7 + $0x38] sm:$0xff]  ;;  %v171_v9 = vld [vmem:[#allocation7 + $0x50] sm:$0xff]  ;;  %s1723_s14 = sshll.u32 %s3021_s13, 4  ;;  %s1724_s14 = int_to_ptr.vmem [resolvable:$true] %s1723_s14 }
  0x5d   :  { %v3151_v10 = vpack.c.bf16 %v164_v7, %v161_v5  ;;  %v3153_v11 = vpack.c.bf16 %v171_v9, %v168_v8  ;;  %v167_v12 = vld [vmem:[#allocation7 + $0x30] sm:$0xff]  ;;  %v170_v13 = vld [vmem:[#allocation7 + $0x48] sm:$0xff]  ;;  %v177_v15 = vld [vmem:[#allocation7 + $0x80] sm:$0xff]  ;;  %s2978_s16 = scalar_lea.vmem %s1724_s14, 128  ;;  %p2983_p13 = scmp.lt.s32.totalorder %s1724_s14, %s1724_s14 }
  0x5e   :  { %v174_v14 = vld [vmem:[#allocation7 + $0x68] sm:$0xff]  ;;  %2274 = vmatprep.subr.bf16.mxu0 %v3149_v6  ;;  %v3157_v16 = vpack.c.bf16 %v170_v13, %v167_v12  ;;  %v173_v18 = vld [vmem:[#allocation7 + $0x60] sm:$0xff]  ;;  %v176_v19 = vld [vmem:[#allocation7 + $0x78] sm:$0xff]  ;;  %p2979_p12 = scmp.ne.s32.totalorder %s1724_s14, %s2978_s16  ;;  %p2984_p0 = scmp.lt.s32.totalorder %s2978_s16, %s2978_s16 }
  0x5f   :  { %2276 = vmatpush1.bf16.msra.mxu0 %v3151_v10  ;;  %v3160_v17 = vpack.c.bf16 %v177_v15, %v174_v14  ;;  %v180_v20 = vld [vmem:[#allocation7 + $0x98] sm:$0xff]  ;;  %v183_v21 = vld [vmem:[#allocation7 + $0xb0] sm:$0xff]  ;;  %v3163_v22 = vpack.c.bf16 %v176_v19, %v173_v18  ;;  %v182_v25 = vld [vmem:[#allocation7 + $0xa8] sm:$0xff] }
  0x60   :  { %2278 = vmatprep.subr.bf16.mxu0 %v3153_v11  ;;  %v179_v23 = vld [vmem:[#allocation7 + $0x90] sm:$0xff]  ;;  %v3166_v24 = vpack.c.bf16 %v183_v21, %v180_v20  ;;  %v166_v27 = vld [vmem:[#allocation7 + $0x28] sm:$0xff]  ;;  %v189_v29 = vld [vmem:[#allocation7 + $0xe0] sm:$0xff]  ;;  %p2985_p1 = por %p2984_p0, %p2983_p13 }
  0x61   :  { %v163_v26 = vld [vmem:[#allocation7 + $0x10] sm:$0xff]  ;;  %v186_v28 = vld [vmem:[#allocation7 + $0xc8] sm:$0xff]  ;;  %v169_v31 = vld [vmem:[#allocation7 + $0x40] sm:$0xff]  ;;  %v3171_v33 = vpack.c.bf16 %v182_v25, %v179_v23 }
  0x62   :  { %v3168_v30 = vpack.c.bf16 %v166_v27, %v163_v26  ;;  %v172_v32 = vld [vmem:[#allocation7 + $0x58] sm:$0xff]  ;;  %v185_v34 = vld [vmem:[#allocation7 + $0xc0] sm:$0xff]  ;;  %v3177_v36 = vpack.c.bf16 %v189_v29, %v186_v28  ;;  %v175_v38 = vld [vmem:[#allocation7 + $0x70] sm:$0xff]  ;;  %p2986_p2 = pnand %p2985_p1, %p2979_p12 }
  0x63   :  { %2280 = vmatpush1.bf16.msra.mxu0 %v3157_v16  ;;  %v3174_v35 = vpack.c.bf16 %v172_v32, %v169_v31  ;;  %v188_v37 = vld [vmem:[#allocation7 + $0xd8] sm:$0xff]  ;;  %v178_v39 = vld [vmem:[#allocation7 + $0x88] sm:$0xff]  ;;  %v195_v41 = vld [vmem:[#allocation7 + $0x110] sm:$0xff] }
  0x64   :  { %2282 = vmatprep.subr.bf16.mxu0 %v3160_v17  ;;  %2307 = vmatpush3.bf16.msra.mxu1 %v3168_v30  ;;  %v192_v40 = vld [vmem:[#allocation7 + $0xf8] sm:$0xff]  ;;  %v3181_v42 = vpack.c.bf16 %v188_v37, %v185_v34  ;;  %v191_v43 = vld [vmem:[#allocation7 + $0xf0] sm:$0xff]  ;;  %v3184_v44 = vpack.c.bf16 %v178_v39, %v175_v38  ;;  %v157_v45 = vld [vmem:[%s3608_s8] sm:$0xff] }
  0x65   :  { %2308 = vmatprep.subr.bf16.mxu1 %v3017_v0  ;;  %v3190_v46 = vpack.c.bf16 %v195_v41, %v192_v40  ;;  %v194_v47 = vld [vmem:[#allocation7 + $0x108] sm:$0xff]  ;;  %v181_v48 = vld [vmem:[#allocation7 + $0xa0] sm:$0xff]  ;;  %v184_v49 = vld [vmem:[#allocation7 + $0xb8] sm:$0xff]  ;;  %159 = vperm.xlu0 %2783, %v157_v45  }
  0x66   :  { %v198_v50 = vld [vmem:[#allocation7 + $0x128] sm:$0xff]  ;;  %v201_v51 = vld [vmem:[#allocation7 + $0x140] sm:$0xff]  ;;  %v3194_v52 = vpack.c.bf16 %v194_v47, %v191_v43  ;;  %v3197_v54 = vpack.c.bf16 %v184_v49, %v181_v48  ;;  %v200_v56 = vld [vmem:[#allocation7 + $0x138] sm:$0xff] }
  0x67   :  { %2284 = vmatpush1.bf16.msra.mxu0 %v3163_v22  ;;  %v197_v53 = vld [vmem:[#allocation7 + $0x120] sm:$0xff]  ;;  %v3200_v55 = vpack.c.bf16 %v201_v51, %v198_v50  ;;  %v187_v57 = vld [vmem:[#allocation7 + $0xd0] sm:$0xff]  ;;  %v190_v58 = vld [vmem:[#allocation7 + $0xe8] sm:$0xff] }
  0x68   :  { %2286 = vmatprep.subr.bf16.mxu0 %v3166_v24  ;;  %2310 = vmatpush3.bf16.msra.mxu1 %v3174_v35  ;;  %v204_v59 = vld [vmem:[#allocation7 + $0x158] sm:$0xff]  ;;  %v207_v60 = vld [vmem:[#allocation7 + $0x170] sm:$0xff]  ;;  %v3204_v61 = vpack.c.bf16 %v200_v56, %v197_v53  ;;  %v3207_v63 = vpack.c.bf16 %v190_v58, %v187_v57  ;;  %v206_v3 = vld [vmem:[#allocation7 + $0x168] sm:$0xff] }
  0x69   :  { %2311 = vmatprep.subr.bf16.mxu1 %v3017_v0  ;;  %v203_v62 = vld [vmem:[#allocation7 + $0x150] sm:$0xff]  ;;  %v3210_v2 = vpack.c.bf16 %v207_v60, %v204_v59  ;;  %v193_v4 = vld [vmem:[#allocation7 + $0x100] sm:$0xff]  ;;  %v196_v5 = vld [vmem:[#allocation7 + $0x118] sm:$0xff] }
  0x6a   :  { %v3214_v7 = vpack.c.bf16 %v206_v3, %v203_v62  ;;  %v3217_v8 = vpack.c.bf16 %v196_v5, %v193_v4  ;;  %v199_v9 = vld [vmem:[#allocation7 + $0x130] sm:$0xff]  ;;  %v202_v12 = vld [vmem:[#allocation7 + $0x148] sm:$0xff]  ;;  %v205_v14 = vld [vmem:[#allocation7 + $0x160] sm:$0xff] }
  0x6b   :  { %2288 = vmatpush1.bf16.msra.mxu0 %v3171_v33  ;;  %v3223_v13 = vpack.c.bf16 %v202_v12, %v199_v9  ;;  %v208_v15 = vld [vmem:[#allocation7 + $0x178] sm:$0xff]  ;;  %v99_v19 = vld [vmem:[#allocation2] sm:$0xff]  ;;  %v100_v23 = vld [vmem:[#allocation2 + $0x8] sm:$0xff] }
  0x6c   :  { %2290 = vmatprep.subr.bf16.mxu0 %v3177_v36  ;;  %2313 = vmatpush3.bf16.msra.mxu1 %v3184_v44  ;;  %v3229_v18 = vpack.c.bf16 %v208_v15, %v205_v14  ;;  %v3270_v20 = vld [vmem:[#allocation5] sm:$0xff]  ;;  %v3273_v25 = vld [vmem:[#allocation5 + $0x8] sm:$0xff]  ;;  %v101_v45 = vld [vmem:[#allocation2 + $0x10] sm:$0xff] }
  0x6d   :  { %2314 = vmatprep.subr.bf16.mxu1 %v3017_v0  ;;  %v126_v21 = vadd.f32 %v3270_v20, %v99_v19  ;;  %v127_v27 = vadd.f32 %v3273_v25, %v100_v23  ;;  %v3279_v43 = vld [vmem:[%s3603_s3] ss:$0 sm:$0xff]  ;;  %v3281_v47 = vld [vmem:[#allocation5 + $0x10] sm:$0xff]  ;;  %v102_v4 = vld [vmem:[#allocation2 + $0x18] sm:$0xff] }
  0x6e   :  { %v128_v50 = vadd.f32 %v3281_v47, %v101_v45  ;;  %v129_v5 = vadd.f32 %v3270_v20, %v102_v4  ;;  %v103_v9 = vld [vmem:[#allocation2 + $0x20] sm:$0xff] }
  0x6f   :  { %2292 = vmatpush1.bf16.msra.mxu0 %v3181_v42  ;;  %v130_v15 = vadd.f32 %v3273_v25, %v103_v9 }
  0x70   :  { %2294 = vmatprep.subr.bf16.mxu0 %v3190_v46  ;;  %2316 = vmatpush3.bf16.msra.mxu1 %v3197_v54 }
  0x71   :  { %2317 = vmatprep.subr.bf16.mxu1 %v3017_v0 }
  0x73   :  { %2296 = vmatpush1.bf16.msra.mxu0 %v3194_v52 }
  0x74   :  { %2298 = vmatprep.subr.bf16.mxu0 %v3200_v55  ;;  %2319 = vmatpush3.bf16.msra.mxu1 %v3207_v63 }
  0x75   :  { %2320 = vmatprep.subr.bf16.mxu1 %v3017_v0 }
  0x77   :  { %2300 = vmatpush1.bf16.msra.mxu0 %v3204_v61 }
  0x78   :  { %2302 = vmatprep.subr.bf16.mxu0 %v3210_v2  ;;  %2322 = vmatpush3.bf16.msra.mxu1 %v3217_v8 }
  0x79   :  { %2323 = vmatprep.subr.bf16.mxu1 %v3017_v0 }
  0x7b   :  { %2304 = vmatpush1.bf16.msra.mxu0 %v3214_v7 }
  0x7c   :  { %2330 = vmatprep.subr.bf16.mxu0 %v3149_v6  ;;  %2325 = vmatpush3.bf16.msra.mxu1 %v3223_v13 }
  0x7d   :  { %2326 = vmatprep.subr.bf16.mxu1 %v3017_v0 }
  0x7e   :  { %274 = vmatmul.mubr.f32.vlgmr.msra.gmra.mrb[0].mxu0 %v3018_v1 }
  0x7f   :  { %2332 = vmatpush1.bf16.msra.mxu0 %v3151_v10  ;;  %438 = vmatprep.mubr.f32.mxu0 %v3018_v1 }
  0x80   :  { %2334 = vmatprep.subr.bf16.mxu0 %v3153_v11  ;;  %2328 = vmatpush3.bf16.msra.mxu1 %v3229_v18 }
  0x81   :  { %2361 = vmatprep.subr.bf16.mxu1 %v3017_v0 }
  0x83   :  { %2336 = vmatpush1.bf16.msra.mxu0 %v3157_v16  ;;  %1956 = vmatmul.mubr.f32.vlgmr.msra.gmra.mrb[0].mxu1 %v3018_v1 }
  0x84   :  { %2338 = vmatprep.subr.bf16.mxu0 %v3160_v17  ;;  %2363 = vmatpush3.bf16.msra.mxu1 %v3168_v30 }
  0x85   :  { %2364 = vmatprep.subr.bf16.mxu1 %v3017_v0  ;;  %1990 = vmatprep.mubr.msk.f32.mxu1 %vm3019_vm0, %v3018_v1 }
  0x87   :  { %2340 = vmatpush1.bf16.msra.mxu0 %v3163_v22 }
  0x88   :  { %2342 = vmatprep.subr.bf16.mxu0 %v3166_v24  ;;  %2366 = vmatpush3.bf16.msra.mxu1 %v3174_v35 }
  0x89   :  { %2367 = vmatprep.subr.bf16.mxu1 %v3017_v0 }
  0x8b   :  { %2344 = vmatpush1.bf16.msra.mxu0 %v3171_v33 }
  0x8c   :  { %2346 = vmatprep.subr.bf16.mxu0 %v3177_v36  ;;  %2369 = vmatpush3.bf16.msra.mxu1 %v3184_v44 }
  0x8d   :  { %2370 = vmatprep.subr.bf16.mxu1 %v3017_v0 }
  0x8f   :  { %2348 = vmatpush1.bf16.msra.mxu0 %v3181_v42 }
  0x90   :  { %2350 = vmatprep.subr.bf16.mxu0 %v3190_v46  ;;  %2372 = vmatpush3.bf16.msra.mxu1 %v3197_v54 }
  0x91   :  { %2373 = vmatprep.subr.bf16.mxu1 %v3017_v0 }
  0x93   :  { %2352 = vmatpush1.bf16.msra.mxu0 %v3194_v52 }
  0x94   :  { %2354 = vmatprep.subr.bf16.mxu0 %v3200_v55  ;;  %2375 = vmatpush3.bf16.msra.mxu1 %v3207_v63 }
  0x95   :  { %2376 = vmatprep.subr.bf16.mxu1 %v3017_v0 }
  0x97   :  { %2356 = vmatpush1.bf16.msra.mxu0 %v3204_v61 }
  0x98   :  { %2358 = vmatprep.subr.bf16.mxu0 %v3210_v2  ;;  %2378 = vmatpush3.bf16.msra.mxu1 %v3217_v8 }
  0x99   :  { %2379 = vmatprep.subr.bf16.mxu1 %v3017_v0 }
  0x9b   :  { %2360 = vmatpush1.bf16.msra.mxu0 %v3214_v7 }
  0x9c   :  { %2386 = vmatprep.subr.bf16.mxu0 %v3149_v6  ;;  %2381 = vmatpush3.bf16.msra.mxu1 %v3223_v13 }
  0x9d   :  { %2382 = vmatprep.subr.bf16.mxu1 %v3017_v0 }
  0xa0   :  { %2384 = vmatpush3.bf16.msra.mxu1 %v3229_v18 }
  0xa1   :  { %2417 = vmatprep.subr.bf16.mxu1 %v3017_v0 }
 0x151   :  { %v275_v26 = vpop.f32.mrb[0].mxu0 }
 0x152   :  { %v350_v28 = vadd.f32 %v275_v26, %v126_v21  ;;  %v277_v29 = vpop.f32.mrb[1].mxu0 }
 0x153   :  { %v357_v32 = vadd.f32 %v277_v29, %v127_v27 }
 0x154   :  { %v1735_v31 = vmul.f32 -1.442695, %v350_v28 }
 0x155   :  { %v1736_v34 = vmul.f32 -1.442695, %v357_v32 }
 0x156   :  { %2784 = vpow2.f32 %v1735_v31  ;;  %v346_v37 = vpop.f32.mrb[0].mxu1 }
 0x157   :  { %v1957_v38 = vpop.f32.mrb[1].mxu1  ;;  %2786 = vpow2.f32 %v1736_v34  ;;  %v364_v49 = vadd.f32 %v3279_v43, %v346_v37  ;;  %v104_v34 = vld [vmem:[#allocation2 + $0x28] sm:$0xff] }
 0x158   :  { %v131_v38 = vadd.f32 %v3281_v47, %v104_v34 }
 0x160   :  { %v2785_v39 = vpop.eup %2784 }
 0x161   :  { %v354_v40 = vadd.f32 1.0, %v2785_v39  ;;  %v2787_v41 = vpop.eup %2786 }
 0x162   :  { %v361_v48 = vadd.f32 1.0, %v2787_v41 }
 0x163   :  { %2788 = vrcp.f32 %v354_v40 }
 0x164   :  { %2790 = vrcp.f32 %v361_v48 }
 0x16d   :  { %v2789_v51 = vpop.eup %2788 }
 0x16e   :  { %v365_v53 = vmul.f32 %v2789_v51, %v364_v49  ;;  %v2791_v57 = vpop.eup %2790 }
 0x16f   :  { %v368_v58 = vsub.f32 1.0, %v2791_v57  ;;  %v370_v62 = vmul.f32 0.0, %v2791_v57  ;;  %v105_v57 = vld [vmem:[#allocation2 + $0x30] sm:$0xff] }
 0x170   :  { %v366_v56 = vadd.f32 %v365_v53, %v128_v50 }
 0x172   :  { %2792 = vtanh.f32 %v366_v56 }
 0x17c   :  { %v2793_v59 = vpop.eup %2792 }
 0x17d   :  { %v369_v60 = vmul.f32 %v2793_v59, %v368_v58  ;;  %v132_v58 = vadd.f32 %v3270_v20, %v105_v57  ;;  %v106_v59 = vld [vmem:[#allocation2 + $0x38] sm:$0xff] }
 0x17e   :  { %v133_v4 = vadd.f32 %v3273_v25, %v106_v59 }
 0x17f   :  { %v3285_v3 = vadd.f32 %v370_v62, %v369_v60 }
 0x181   :  { %439 = vmatmul.mubr.f32.vlgmr.msra.gmra.mrb[2].mxu0 %v3285_v3  ;;  %1991 = vmatmul.mubr.f32.vlgmr.msra.gmra.mrb[2].mxu1 %v3285_v3 }
 0x182   :  { %2388 = vmatpush1.bf16.msra.mxu0 %v3151_v10  ;;  %2419 = vmatpush3.bf16.msra.mxu1 %v3168_v30 }
 0x183   :  { %2390 = vmatprep.subr.bf16.mxu0 %v3153_v11  ;;  %2420 = vmatprep.subr.bf16.mxu1 %v3017_v0 }
 0x184   :  { %603 = vmatprep.mubr.f32.mxu0 %v3018_v1  ;;  %2025 = vmatprep.mubr.msk.f32.mxu1 %vm3019_vm0, %v3018_v1 }
 0x186   :  { %2392 = vmatpush1.bf16.msra.mxu0 %v3157_v16  ;;  %2422 = vmatpush3.bf16.msra.mxu1 %v3174_v35 }
 0x187   :  { %2394 = vmatprep.subr.bf16.mxu0 %v3160_v17  ;;  %2423 = vmatprep.subr.bf16.mxu1 %v3017_v0 }
 0x18a   :  { %2396 = vmatpush1.bf16.msra.mxu0 %v3163_v22  ;;  %2425 = vmatpush3.bf16.msra.mxu1 %v3184_v44 }
 0x18b   :  { %2398 = vmatprep.subr.bf16.mxu0 %v3166_v24  ;;  %2426 = vmatprep.subr.bf16.mxu1 %v3017_v0 }
 0x18e   :  { %2400 = vmatpush1.bf16.msra.mxu0 %v3171_v33  ;;  %2428 = vmatpush3.bf16.msra.mxu1 %v3197_v54 }
 0x18f   :  { %2402 = vmatprep.subr.bf16.mxu0 %v3177_v36  ;;  %2429 = vmatprep.subr.bf16.mxu1 %v3017_v0 }
 0x192   :  { %2404 = vmatpush1.bf16.msra.mxu0 %v3181_v42  ;;  %2431 = vmatpush3.bf16.msra.mxu1 %v3207_v63 }
 0x193   :  { %2406 = vmatprep.subr.bf16.mxu0 %v3190_v46  ;;  %2432 = vmatprep.subr.bf16.mxu1 %v3017_v0 }
 0x196   :  { %2408 = vmatpush1.bf16.msra.mxu0 %v3194_v52  ;;  %2434 = vmatpush3.bf16.msra.mxu1 %v3217_v8 }
 0x197   :  { %2410 = vmatprep.subr.bf16.mxu0 %v3200_v55  ;;  %2435 = vmatprep.subr.bf16.mxu1 %v3017_v0 }
 0x19a   :  { %2412 = vmatpush1.bf16.msra.mxu0 %v3204_v61  ;;  %2437 = vmatpush3.bf16.msra.mxu1 %v3223_v13 }
 0x19b   :  { %2414 = vmatprep.subr.bf16.mxu0 %v3210_v2  ;;  %2438 = vmatprep.subr.bf16.mxu1 %v3017_v0 }
 0x19e   :  { %2416 = vmatpush1.bf16.msra.mxu0 %v3214_v7  ;;  %2440 = vmatpush3.bf16.msra.mxu1 %v3229_v18 }
 0x19f   :  { %2442 = vmatprep.subr.bf16.mxu0 %v3149_v6  ;;  %2473 = vmatprep.subr.bf16.mxu1 %v3017_v0 }
 0x254   :  { %v440_v12 = vpop.f32.mrb[2].mxu0  ;;  %v511_v14 = vpop.f32.mrb[2].mxu1 }
 0x255   :  { %v515_v19 = vadd.f32 %v440_v12, %v129_v5  ;;  %v442_v21 = vpop.f32.mrb[3].mxu0  ;;  %v1992_v23 = vpop.f32.mrb[3].mxu1  ;;  %v529_v39 = vadd.f32 %v3279_v43, %v511_v14 }
 0x256   :  { %v522_v27 = vadd.f32 %v442_v21, %v130_v15 }
 0x257   :  { %v1737_v26 = vmul.f32 -1.442695, %v515_v19 }
 0x258   :  { %v1738_v28 = vmul.f32 -1.442695, %v522_v27  ;;  %v107_v27 = vld [vmem:[#allocation2 + $0x40] sm:$0xff] }
 0x259   :  { %2794 = vpow2.f32 %v1737_v26 }
 0x25a   :  { %2796 = vpow2.f32 %v1738_v28 }
 0x263   :  { %v2795_v29 = vpop.eup %2794 }
 0x264   :  { %v519_v31 = vadd.f32 1.0, %v2795_v29  ;;  %v2797_v32 = vpop.eup %2796  ;;  %v134_v29 = vadd.f32 %v3281_v47, %v107_v27 }
 0x265   :  { %v526_v37 = vadd.f32 1.0, %v2797_v32 }
 0x266   :  { %2798 = vrcp.f32 %v519_v31 }
 0x267   :  { %2800 = vrcp.f32 %v526_v37 }
 0x270   :  { %v2799_v40 = vpop.eup %2798 }
 0x271   :  { %v530_v41 = vmul.f32 %v2799_v40, %v529_v39  ;;  %v2801_v48 = vpop.eup %2800 }
 0x272   :  { %v533_v49 = vsub.f32 1.0, %v2801_v48  ;;  %v535_v53 = vmul.f32 %v2801_v48, %v3285_v3 }
 0x273   :  { %v531_v45 = vadd.f32 %v530_v41, %v131_v38 }
 0x275   :  { %2802 = vtanh.f32 %v531_v45 }
 0x27f   :  { %v2803_v50 = vpop.eup %2802 }
 0x280   :  { %v534_v51 = vmul.f32 %v2803_v50, %v533_v49  ;;  %v108_v49 = vld [vmem:[#allocation2 + $0x48] sm:$0xff] }
 0x281   :  { %v135_v50 = vadd.f32 %v3270_v20, %v108_v49 }
 0x282   :  { %v3329_v56 = vadd.f32 %v535_v53, %v534_v51  ;;  %v109_v51 = vld [vmem:[#allocation2 + $0x50] sm:$0xff] }
 0x284   :  { %604 = vmatmul.mubr.f32.vlgmr.msra.gmra.mrb[4].mxu0 %v3329_v56  ;;  %2026 = vmatmul.mubr.f32.vlgmr.msra.gmra.mrb[4].mxu1 %v3329_v56 }
 0x285   :  { %2444 = vmatpush1.bf16.msra.mxu0 %v3151_v10  ;;  %2475 = vmatpush3.bf16.msra.mxu1 %v3168_v30 }
 0x286   :  { %2446 = vmatprep.subr.bf16.mxu0 %v3153_v11  ;;  %2476 = vmatprep.subr.bf16.mxu1 %v3017_v0 }
 0x287   :  { %768 = vmatprep.mubr.f32.mxu0 %v3018_v1  ;;  %2060 = vmatprep.mubr.msk.f32.mxu1 %vm3019_vm0, %v3018_v1 }
 0x289   :  { %2448 = vmatpush1.bf16.msra.mxu0 %v3157_v16  ;;  %2478 = vmatpush3.bf16.msra.mxu1 %v3174_v35 }
 0x28a   :  { %2450 = vmatprep.subr.bf16.mxu0 %v3160_v17  ;;  %2479 = vmatprep.subr.bf16.mxu1 %v3017_v0 }
 0x28d   :  { %2452 = vmatpush1.bf16.msra.mxu0 %v3163_v22  ;;  %2481 = vmatpush3.bf16.msra.mxu1 %v3184_v44 }
 0x28e   :  { %2454 = vmatprep.subr.bf16.mxu0 %v3166_v24  ;;  %2482 = vmatprep.subr.bf16.mxu1 %v3017_v0 }
 0x291   :  { %2456 = vmatpush1.bf16.msra.mxu0 %v3171_v33  ;;  %2484 = vmatpush3.bf16.msra.mxu1 %v3197_v54 }
 0x292   :  { %2458 = vmatprep.subr.bf16.mxu0 %v3177_v36  ;;  %2485 = vmatprep.subr.bf16.mxu1 %v3017_v0 }
 0x295   :  { %2460 = vmatpush1.bf16.msra.mxu0 %v3181_v42  ;;  %2487 = vmatpush3.bf16.msra.mxu1 %v3207_v63 }
 0x296   :  { %2462 = vmatprep.subr.bf16.mxu0 %v3190_v46  ;;  %2488 = vmatprep.subr.bf16.mxu1 %v3017_v0 }
 0x299   :  { %2464 = vmatpush1.bf16.msra.mxu0 %v3194_v52  ;;  %2490 = vmatpush3.bf16.msra.mxu1 %v3217_v8 }
 0x29a   :  { %2466 = vmatprep.subr.bf16.mxu0 %v3200_v55  ;;  %2491 = vmatprep.subr.bf16.mxu1 %v3017_v0 }
 0x29d   :  { %2468 = vmatpush1.bf16.msra.mxu0 %v3204_v61  ;;  %2493 = vmatpush3.bf16.msra.mxu1 %v3223_v13 }
 0x29e   :  { %2470 = vmatprep.subr.bf16.mxu0 %v3210_v2  ;;  %2494 = vmatprep.subr.bf16.mxu1 %v3017_v0 }
 0x2a1   :  { %2472 = vmatpush1.bf16.msra.mxu0 %v3214_v7  ;;  %2496 = vmatpush3.bf16.msra.mxu1 %v3229_v18 }
 0x2a2   :  { %2498 = vmatprep.subr.bf16.mxu0 %v3149_v6  ;;  %2529 = vmatprep.subr.bf16.mxu1 %v3017_v0 }
 0x357   :  { %v605_v60 = vpop.f32.mrb[4].mxu0  ;;  %v676_v62 = vpop.f32.mrb[4].mxu1 }
 0x358   :  { %v680_v5 = vadd.f32 %v605_v60, %v132_v58  ;;  %v607_v9 = vpop.f32.mrb[5].mxu0  ;;  %v2027_v12 = vpop.f32.mrb[5].mxu1  ;;  %v694_v31 = vadd.f32 %v3279_v43, %v676_v62  ;;  %v136_v58 = vadd.f32 %v3273_v25, %v109_v51 }
 0x359   :  { %v687_v15 = vadd.f32 %v607_v9, %v133_v4 }
 0x35a   :  { %v1739_v14 = vmul.f32 -1.442695, %v680_v5 }
 0x35b   :  { %v1740_v19 = vmul.f32 -1.442695, %v687_v15 }
 0x35c   :  { %2804 = vpow2.f32 %v1739_v14 }
 0x35d   :  { %2806 = vpow2.f32 %v1740_v19  ;;  %v110_v19 = vld [vmem:[#allocation2 + $0x58] sm:$0xff] }
 0x366   :  { %v2805_v21 = vpop.eup %2804 }
 0x367   :  { %v684_v23 = vadd.f32 1.0, %v2805_v21  ;;  %v2807_v26 = vpop.eup %2806 }
 0x368   :  { %v691_v28 = vadd.f32 1.0, %v2807_v26 }
 0x369   :  { %2808 = vrcp.f32 %v684_v23  ;;  %v137_v23 = vadd.f32 %v3281_v47, %v110_v19 }
 0x36a   :  { %2810 = vrcp.f32 %v691_v28 }
 0x373   :  { %v2809_v32 = vpop.eup %2808 }
 0x374   :  { %v695_v34 = vmul.f32 %v2809_v32, %v694_v31  ;;  %v2811_v38 = vpop.eup %2810 }
 0x375   :  { %v698_v39 = vsub.f32 1.0, %v2811_v38  ;;  %v700_v45 = vmul.f32 %v2811_v38, %v3329_v56 }
 0x376   :  { %v696_v37 = vadd.f32 %v695_v34, %v134_v29 }
 0x378   :  { %2812 = vtanh.f32 %v696_v37 }
 0x382   :  { %v2813_v40 = vpop.eup %2812 }
 0x383   :  { %v699_v41 = vmul.f32 %v2813_v40, %v698_v39  ;;  %v111_v40 = vld [vmem:[#allocation2 + $0x60] sm:$0xff] }
 0x385   :  { %v3373_v48 = vadd.f32 %v700_v45, %v699_v41  ;;  %v138_v41 = vadd.f32 %v3270_v20, %v111_v40  ;;  %v112_v45 = vld [vmem:[#allocation2 + $0x68] sm:$0xff]  ;;  %v115_v40 = vld [vmem:[#allocation2 + $0x80] sm:$0xff] }
 0x386   :  { %v139_v51 = vadd.f32 %v3273_v25, %v112_v45 }
 0x387   :  { %769 = vmatmul.mubr.f32.vlgmr.msra.gmra.mrb[6].mxu0 %v3373_v48  ;;  %2061 = vmatmul.mubr.f32.vlgmr.msra.gmra.mrb[6].mxu1 %v3373_v48 }
 0x388   :  { %2500 = vmatpush1.bf16.msra.mxu0 %v3151_v10  ;;  %2531 = vmatpush3.bf16.msra.mxu1 %v3168_v30 }
 0x389   :  { %2502 = vmatprep.subr.bf16.mxu0 %v3153_v11  ;;  %2532 = vmatprep.subr.bf16.mxu1 %v3017_v0 }
 0x38a   :  { %933 = vmatprep.mubr.f32.mxu0 %v3018_v1  ;;  %2095 = vmatprep.mubr.msk.f32.mxu1 %vm3019_vm0, %v3018_v1 }
 0x38c   :  { %2504 = vmatpush1.bf16.msra.mxu0 %v3157_v16  ;;  %2534 = vmatpush3.bf16.msra.mxu1 %v3174_v35 }
 0x38d   :  { %2506 = vmatprep.subr.bf16.mxu0 %v3160_v17  ;;  %2535 = vmatprep.subr.bf16.mxu1 %v3017_v0 }
 0x390   :  { %2508 = vmatpush1.bf16.msra.mxu0 %v3163_v22  ;;  %2537 = vmatpush3.bf16.msra.mxu1 %v3184_v44 }
 0x391   :  { %2510 = vmatprep.subr.bf16.mxu0 %v3166_v24  ;;  %2538 = vmatprep.subr.bf16.mxu1 %v3017_v0 }
 0x394   :  { %2512 = vmatpush1.bf16.msra.mxu0 %v3171_v33  ;;  %2540 = vmatpush3.bf16.msra.mxu1 %v3197_v54 }
 0x395   :  { %2514 = vmatprep.subr.bf16.mxu0 %v3177_v36  ;;  %2541 = vmatprep.subr.bf16.mxu1 %v3017_v0 }
 0x398   :  { %2516 = vmatpush1.bf16.msra.mxu0 %v3181_v42  ;;  %2543 = vmatpush3.bf16.msra.mxu1 %v3207_v63 }
 0x399   :  { %2518 = vmatprep.subr.bf16.mxu0 %v3190_v46  ;;  %2544 = vmatprep.subr.bf16.mxu1 %v3017_v0 }
 0x39c   :  { %2520 = vmatpush1.bf16.msra.mxu0 %v3194_v52  ;;  %2546 = vmatpush3.bf16.msra.mxu1 %v3217_v8 }
 0x39d   :  { %2522 = vmatprep.subr.bf16.mxu0 %v3200_v55  ;;  %2547 = vmatprep.subr.bf16.mxu1 %v3017_v0 }
 0x3a0   :  { %2524 = vmatpush1.bf16.msra.mxu0 %v3204_v61  ;;  %2549 = vmatpush3.bf16.msra.mxu1 %v3223_v13 }
 0x3a1   :  { %2526 = vmatprep.subr.bf16.mxu0 %v3210_v2  ;;  %2550 = vmatprep.subr.bf16.mxu1 %v3017_v0 }
 0x3a4   :  { %2528 = vmatpush1.bf16.msra.mxu0 %v3214_v7  ;;  %2552 = vmatpush3.bf16.msra.mxu1 %v3229_v18 }
 0x3a5   :  { %2554 = vmatprep.subr.bf16.mxu0 %v3149_v6  ;;  %2585 = vmatprep.subr.bf16.mxu1 %v3017_v0 }
 0x45a   :  { %v770_v53 = vpop.f32.mrb[6].mxu0  ;;  %v841_v57 = vpop.f32.mrb[6].mxu1 }
 0x45b   :  { %v845_v59 = vadd.f32 %v770_v53, %v135_v50  ;;  %v772_v60 = vpop.f32.mrb[7].mxu0  ;;  %v2062_v62 = vpop.f32.mrb[7].mxu1  ;;  %v859_v26 = vadd.f32 %v3279_v43, %v841_v57 }
 0x45c   :  { %v852_v5 = vadd.f32 %v772_v60, %v136_v58 }
 0x45d   :  { %v1741_v4 = vmul.f32 -1.442695, %v845_v59 }
 0x45e   :  { %v1742_v9 = vmul.f32 -1.442695, %v852_v5 }
 0x45f   :  { %2814 = vpow2.f32 %v1741_v4 }
 0x460   :  { %2816 = vpow2.f32 %v1742_v9 }
 0x469   :  { %v2815_v12 = vpop.eup %2814 }
 0x46a   :  { %v849_v14 = vadd.f32 1.0, %v2815_v12  ;;  %v2817_v15 = vpop.eup %2816  ;;  %v113_v12 = vld [vmem:[#allocation2 + $0x70] sm:$0xff] }
 0x46b   :  { %v856_v21 = vadd.f32 1.0, %v2817_v15  ;;  %v140_v15 = vadd.f32 %v3281_v47, %v113_v12 }
 0x46c   :  { %2818 = vrcp.f32 %v849_v14 }
 0x46d   :  { %2820 = vrcp.f32 %v856_v21 }
 0x476   :  { %v2819_v27 = vpop.eup %2818 }
 0x477   :  { %v860_v28 = vmul.f32 %v2819_v27, %v859_v26  ;;  %v2821_v31 = vpop.eup %2820 }
 0x478   :  { %v863_v32 = vsub.f32 1.0, %v2821_v31  ;;  %v865_v38 = vmul.f32 %v2821_v31, %v3373_v48 }
 0x479   :  { %v861_v29 = vadd.f32 %v860_v28, %v137_v23 }
 0x47b   :  { %2822 = vtanh.f32 %v861_v29 }
 0x485   :  { %v2823_v34 = vpop.eup %2822 }
 0x486   :  { %v864_v37 = vmul.f32 %v2823_v34, %v863_v32 }
 0x488   :  { %v3417_v39 = vadd.f32 %v865_v38, %v864_v37  ;;  %v114_v37 = vld [vmem:[#allocation2 + $0x78] sm:$0xff] }
 0x489   :  { %v141_v38 = vadd.f32 %v3270_v20, %v114_v37 }
 0x48a   :  { %934 = vmatmul.mubr.f32.vlgmr.msra.gmra.mrb[8].mxu0 %v3417_v39  ;;  %2096 = vmatmul.mubr.f32.vlgmr.msra.gmra.mrb[8].mxu1 %v3417_v39 }
 0x48b   :  { %2556 = vmatpush1.bf16.msra.mxu0 %v3151_v10  ;;  %2587 = vmatpush3.bf16.msra.mxu1 %v3168_v30 }
 0x48c   :  { %2558 = vmatprep.subr.bf16.mxu0 %v3153_v11  ;;  %2588 = vmatprep.subr.bf16.mxu1 %v3017_v0 }
 0x48d   :  { %1098 = vmatprep.mubr.f32.mxu0 %v3018_v1  ;;  %2130 = vmatprep.mubr.msk.f32.mxu1 %vm3019_vm0, %v3018_v1 }
 0x48f   :  { %2560 = vmatpush1.bf16.msra.mxu0 %v3157_v16  ;;  %2590 = vmatpush3.bf16.msra.mxu1 %v3174_v35 }
 0x490   :  { %2562 = vmatprep.subr.bf16.mxu0 %v3160_v17  ;;  %2591 = vmatprep.subr.bf16.mxu1 %v3017_v0 }
 0x493   :  { %2564 = vmatpush1.bf16.msra.mxu0 %v3163_v22  ;;  %2593 = vmatpush3.bf16.msra.mxu1 %v3184_v44 }
 0x494   :  { %2566 = vmatprep.subr.bf16.mxu0 %v3166_v24  ;;  %2594 = vmatprep.subr.bf16.mxu1 %v3017_v0 }
 0x497   :  { %2568 = vmatpush1.bf16.msra.mxu0 %v3171_v33  ;;  %2596 = vmatpush3.bf16.msra.mxu1 %v3197_v54 }
 0x498   :  { %2570 = vmatprep.subr.bf16.mxu0 %v3177_v36  ;;  %2597 = vmatprep.subr.bf16.mxu1 %v3017_v0 }
 0x49b   :  { %2572 = vmatpush1.bf16.msra.mxu0 %v3181_v42  ;;  %2599 = vmatpush3.bf16.msra.mxu1 %v3207_v63 }
 0x49c   :  { %2574 = vmatprep.subr.bf16.mxu0 %v3190_v46  ;;  %2600 = vmatprep.subr.bf16.mxu1 %v3017_v0 }
 0x49f   :  { %2576 = vmatpush1.bf16.msra.mxu0 %v3194_v52  ;;  %2602 = vmatpush3.bf16.msra.mxu1 %v3217_v8 }
 0x4a0   :  { %2578 = vmatprep.subr.bf16.mxu0 %v3200_v55  ;;  %2603 = vmatprep.subr.bf16.mxu1 %v3017_v0 }
 0x4a3   :  { %2580 = vmatpush1.bf16.msra.mxu0 %v3204_v61  ;;  %2605 = vmatpush3.bf16.msra.mxu1 %v3223_v13 }
 0x4a4   :  { %2582 = vmatprep.subr.bf16.mxu0 %v3210_v2  ;;  %2606 = vmatprep.subr.bf16.mxu1 %v3017_v0 }
 0x4a7   :  { %2584 = vmatpush1.bf16.msra.mxu0 %v3214_v7  ;;  %2608 = vmatpush3.bf16.msra.mxu1 %v3229_v18 }
 0x4a8   :  { %2610 = vmatprep.subr.bf16.mxu0 %v3149_v6  ;;  %2641 = vmatprep.subr.bf16.mxu1 %v3017_v0 }
 0x55d   :  { %v935_v49 = vpop.f32.mrb[8].mxu0  ;;  %v1006_v50 = vpop.f32.mrb[8].mxu1 }
 0x55e   :  { %v1010_v53 = vadd.f32 %v935_v49, %v138_v41  ;;  %v937_v57 = vpop.f32.mrb[9].mxu0  ;;  %v2097_v58 = vpop.f32.mrb[9].mxu1  ;;  %v1024_v19 = vadd.f32 %v3279_v43, %v1006_v50  ;;  %v142_v49 = vadd.f32 %v3273_v25, %v115_v40  ;;  %v1531_v40 = vld [vmem:[#allocation8 + $0x10] sm:$0xff] }
 0x55f   :  { %v1017_v60 = vadd.f32 %v937_v57, %v139_v51 }
 0x560   :  { %v1743_v59 = vmul.f32 -1.442695, %v1010_v53 }
 0x561   :  { %v1744_v62 = vmul.f32 -1.442695, %v1017_v60 }
 0x562   :  { %2824 = vpow2.f32 %v1743_v59 }
 0x563   :  { %2826 = vpow2.f32 %v1744_v62 }
 0x56c   :  { %v2825_v4 = vpop.eup %2824 }
 0x56d   :  { %v1014_v5 = vadd.f32 1.0, %v2825_v4  ;;  %v2827_v9 = vpop.eup %2826  ;;  %v116_v4 = vld [vmem:[#allocation2 + $0x88] sm:$0xff] }
 0x56e   :  { %v1021_v14 = vadd.f32 1.0, %v2827_v9  ;;  %v143_v9 = vadd.f32 %v3281_v47, %v116_v4 }
 0x56f   :  { %2828 = vrcp.f32 %v1014_v5 }
 0x570   :  { %2830 = vrcp.f32 %v1021_v14 }
 0x579   :  { %v2829_v21 = vpop.eup %2828 }
 0x57a   :  { %v1025_v23 = vmul.f32 %v2829_v21, %v1024_v19  ;;  %v2831_v27 = vpop.eup %2830 }
 0x57b   :  { %v1028_v28 = vsub.f32 1.0, %v2831_v27  ;;  %v1030_v32 = vmul.f32 %v2831_v27, %v3417_v39 }
 0x57c   :  { %v1026_v26 = vadd.f32 %v1025_v23, %v140_v15 }
 0x57e   :  { %2832 = vtanh.f32 %v1026_v26 }
 0x588   :  { %v2833_v29 = vpop.eup %2832 }
 0x589   :  { %v1029_v31 = vmul.f32 %v2833_v29, %v1028_v28 }
 0x58b   :  { %v3461_v34 = vadd.f32 %v1030_v32, %v1029_v31 }
 0x58d   :  { %1099 = vmatmul.mubr.f32.vlgmr.msra.gmra.mrb[10].mxu0 %v3461_v34  ;;  %2131 = vmatmul.mubr.f32.vlgmr.msra.gmra.mrb[10].mxu1 %v3461_v34 }
 0x58e   :  { %2612 = vmatpush1.bf16.msra.mxu0 %v3151_v10  ;;  %2643 = vmatpush3.bf16.msra.mxu1 %v3168_v30 }
 0x58f   :  { %2614 = vmatprep.subr.bf16.mxu0 %v3153_v11  ;;  %2644 = vmatprep.subr.bf16.mxu1 %v3017_v0 }
 0x590   :  { %1263 = vmatprep.mubr.f32.mxu0 %v3018_v1  ;;  %2165 = vmatprep.mubr.msk.f32.mxu1 %vm3019_vm0, %v3018_v1 }
 0x592   :  { %2616 = vmatpush1.bf16.msra.mxu0 %v3157_v16  ;;  %2646 = vmatpush3.bf16.msra.mxu1 %v3174_v35 }
 0x593   :  { %2618 = vmatprep.subr.bf16.mxu0 %v3160_v17  ;;  %2647 = vmatprep.subr.bf16.mxu1 %v3017_v0 }
 0x596   :  { %2620 = vmatpush1.bf16.msra.mxu0 %v3163_v22  ;;  %2649 = vmatpush3.bf16.msra.mxu1 %v3184_v44 }
 0x597   :  { %2622 = vmatprep.subr.bf16.mxu0 %v3166_v24  ;;  %2650 = vmatprep.subr.bf16.mxu1 %v3017_v0 }
 0x59a   :  { %2624 = vmatpush1.bf16.msra.mxu0 %v3171_v33  ;;  %2652 = vmatpush3.bf16.msra.mxu1 %v3197_v54 }
 0x59b   :  { %2626 = vmatprep.subr.bf16.mxu0 %v3177_v36  ;;  %2653 = vmatprep.subr.bf16.mxu1 %v3017_v0 }
 0x59e   :  { %2628 = vmatpush1.bf16.msra.mxu0 %v3181_v42  ;;  %2655 = vmatpush3.bf16.msra.mxu1 %v3207_v63 }
 0x59f   :  { %2630 = vmatprep.subr.bf16.mxu0 %v3190_v46  ;;  %2656 = vmatprep.subr.bf16.mxu1 %v3017_v0 }
 0x5a2   :  { %2632 = vmatpush1.bf16.msra.mxu0 %v3194_v52  ;;  %2658 = vmatpush3.bf16.msra.mxu1 %v3217_v8 }
 0x5a3   :  { %2634 = vmatprep.subr.bf16.mxu0 %v3200_v55  ;;  %2659 = vmatprep.subr.bf16.mxu1 %v3017_v0 }
 0x5a6   :  { %2636 = vmatpush1.bf16.msra.mxu0 %v3204_v61  ;;  %2661 = vmatpush3.bf16.msra.mxu1 %v3223_v13 }
 0x5a7   :  { %2638 = vmatprep.subr.bf16.mxu0 %v3210_v2  ;;  %2662 = vmatprep.subr.bf16.mxu1 %v3017_v0 }
 0x5aa   :  { %2640 = vmatpush1.bf16.msra.mxu0 %v3214_v7  ;;  %2664 = vmatpush3.bf16.msra.mxu1 %v3229_v18 }
 0x5ab   :  { %2666 = vmatprep.subr.bf16.mxu0 %v3149_v6  ;;  %2697 = vmatprep.subr.bf16.mxu1 %v3017_v0 }
 0x660   :  { %v1100_v41 = vpop.f32.mrb[10].mxu0  ;;  %v1171_v45 = vpop.f32.mrb[10].mxu1 }
 0x661   :  { %v1175_v50 = vadd.f32 %v1100_v41, %v141_v38  ;;  %v1102_v51 = vpop.f32.mrb[11].mxu0  ;;  %v2132_v53 = vpop.f32.mrb[11].mxu1  ;;  %v1189_v12 = vadd.f32 %v3279_v43, %v1171_v45  ;;  %v1532_v41 = vld [vmem:[#allocation8 + $0x18] sm:$0xff] }
 0x662   :  { %v1182_v58 = vadd.f32 %v1102_v51, %v142_v49  ;;  %v2725_v45 = vpack.c.bf16 %v1532_v41, %v1531_v40  ;;  %v1533_v49 = vld [vmem:[#allocation8 + $0x20] sm:$0xff]  ;;  %v1535_v53 = vld [vmem:[#allocation8 + $0x30] sm:$0xff] }
 0x663   :  { %v1745_v57 = vmul.f32 -1.442695, %v1175_v50  ;;  %v1534_v50 = vld [vmem:[#allocation8 + $0x28] sm:$0xff] }
 0x664   :  { %v1746_v59 = vmul.f32 -1.442695, %v1182_v58  ;;  %v2728_v51 = vpack.c.bf16 %v1534_v50, %v1533_v49  ;;  %v1537_v58 = vld [vmem:[#allocation8 + $0x40] sm:$0xff]  ;;  %v2866_v50 = vld [vmem:[#allocation5 + $0x10] sm:$0xff] }
 0x665   :  { %2834 = vpow2.f32 %v1745_v57 }
 0x666   :  { %2836 = vpow2.f32 %v1746_v59  ;;  %v1538_v59 = vld [vmem:[#allocation8 + $0x48] sm:$0xff] }
 0x66f   :  { %v2835_v60 = vpop.eup %2834 }
 0x670   :  { %v1179_v6 = vadd.f32 1.0, %v2835_v60  ;;  %v2837_v62 = vpop.eup %2836  ;;  %v2734_v60 = vpack.c.bf16 %v1538_v59, %v1537_v58 }
 0x671   :  { %v1186_v5 = vadd.f32 1.0, %v2837_v62  ;;  %v1540_v62 = vld [vmem:[#allocation8 + $0x58] sm:$0xff] }
 0x672   :  { %2838 = vrcp.f32 %v1179_v6  ;;  %v1539_v6 = vld [vmem:[#allocation8 + $0x50] sm:$0xff] }
 0x673   :  { %2840 = vrcp.f32 %v1186_v5  ;;  %v2737_v4 = vpack.c.bf16 %v1540_v62, %v1539_v6  ;;  %v1541_v5 = vld [vmem:[#allocation8 + $0x60] sm:$0xff] }
 0x67c   :  { %v2839_v14 = vpop.eup %2838 }
 0x67d   :  { %v1190_v15 = vmul.f32 %v2839_v14, %v1189_v12  ;;  %v2841_v21 = vpop.eup %2840  ;;  %v1543_v14 = vld [vmem:[#allocation8 + $0x70] sm:$0xff] }
 0x67e   :  { %v1193_v23 = vsub.f32 1.0, %v2841_v21  ;;  %v1195_v28 = vmul.f32 %v2841_v21, %v3461_v34  ;;  %v1623_v21 = vld [vmem:[#allocation10] sm:$0xff] }
 0x67f   :  { %v1191_v19 = vadd.f32 %v1190_v15, %v143_v9  ;;  %v1542_v9 = vld [vmem:[#allocation8 + $0x68] sm:$0xff]  ;;  %v1544_v15 = vld [vmem:[#allocation8 + $0x78] sm:$0xff] }
 0x680   :  { %v2740_v12 = vpack.c.bf16 %v1542_v9, %v1541_v5 }
 0x681   :  { %2842 = vtanh.f32 %v1191_v19  ;;  %v2743_v19 = vpack.c.bf16 %v1544_v15, %v1543_v14 }
 0x68b   :  { %v2843_v26 = vpop.eup %2842 }
 0x68c   :  { %v1194_v27 = vmul.f32 %v2843_v26, %v1193_v23  ;;  %v1624_v23 = vld [vmem:[#allocation10 + $0x8] sm:$0xff]  ;;  %v1625_v26 = vld [vmem:[#allocation10 + $0x10] sm:$0xff] }
 0x68e   :  { %v3505_v29 = vadd.f32 %v1195_v28, %v1194_v27  ;;  %v2746_v27 = vpack.c.bf16 %v1624_v23, %v1623_v21  ;;  %v1626_v28 = vld [vmem:[#allocation10 + $0x18] sm:$0xff] }
 0x690   :  { %1264 = vmatmul.mubr.f32.vlgmr.msra.gmra.mrb[12].mxu0 %v3505_v29  ;;  %2166 = vmatmul.mubr.f32.vlgmr.msra.gmra.mrb[12].mxu1 %v3505_v29 }
 0x691   :  { %2668 = vmatpush1.bf16.msra.mxu0 %v3151_v10  ;;  %2699 = vmatpush3.bf16.msra.mxu1 %v3168_v30  ;;  %v117_v10 = vld [vmem:[#allocation2 + $0x90] sm:$0xff] }
 0x692   :  { %2670 = vmatprep.subr.bf16.mxu0 %v3153_v11  ;;  %2700 = vmatprep.subr.bf16.mxu1 %v3017_v0  ;;  %v144_v11 = vadd.f32 %v3270_v20, %v117_v10  ;;  %v2749_v10 = vpack.c.bf16 %v1626_v28, %v1625_v26  ;;  %v1638_v28 = vld [vmem:[#allocation10 + $0x78] sm:$0xff] }
 0x693   :  { %1428 = vmatprep.mubr.f32.mxu0 %v3018_v1  ;;  %2200 = vmatprep.mubr.msk.f32.mxu1 %vm3019_vm0, %v3018_v1 }
 0x695   :  { %2672 = vmatpush1.bf16.msra.mxu0 %v3157_v16  ;;  %2702 = vmatpush3.bf16.msra.mxu1 %v3174_v35  ;;  %v118_v16 = vld [vmem:[#allocation2 + $0x98] sm:$0xff] }
 0x696   :  { %2674 = vmatprep.subr.bf16.mxu0 %v3160_v17  ;;  %2703 = vmatprep.subr.bf16.mxu1 %v3017_v0 }
 0x699   :  { %2676 = vmatpush1.bf16.msra.mxu0 %v3163_v22  ;;  %2705 = vmatpush3.bf16.msra.mxu1 %v3184_v44 }
 0x69a   :  { %2678 = vmatprep.subr.bf16.mxu0 %v3166_v24  ;;  %2706 = vmatprep.subr.bf16.mxu1 %v3017_v0  ;;  %v145_v24 = vadd.f32 %v3273_v25, %v118_v16  ;;  %v1628_v16 = vld [vmem:[#allocation10 + $0x28] sm:$0xff] }
 0x69d   :  { %2680 = vmatpush1.bf16.msra.mxu0 %v3171_v33  ;;  %2708 = vmatpush3.bf16.msra.mxu1 %v3197_v54 }
 0x69e   :  { %2682 = vmatprep.subr.bf16.mxu0 %v3177_v36  ;;  %2709 = vmatprep.subr.bf16.mxu1 %v3017_v0 }
 0x6a1   :  { %2684 = vmatpush1.bf16.msra.mxu0 %v3181_v42  ;;  %2711 = vmatpush3.bf16.msra.mxu1 %v3207_v63 }
 0x6a2   :  { %2686 = vmatprep.subr.bf16.mxu0 %v3190_v46  ;;  %2712 = vmatprep.subr.bf16.mxu1 %v3017_v0 }
 0x6a5   :  { %2688 = vmatpush1.bf16.msra.mxu0 %v3194_v52  ;;  %2714 = vmatpush3.bf16.msra.mxu1 %v3217_v8 }
 0x6a6   :  { %2690 = vmatprep.subr.bf16.mxu0 %v3200_v55  ;;  %2715 = vmatprep.subr.bf16.mxu1 %v3017_v0  ;;  %v119_v55 = vld [vmem:[#allocation2 + $0xa0] sm:$0xff] }
 0x6a7   :  { %v146_v63 = vadd.f32 %v3281_v47, %v119_v55  ;;  %v1530_v47 = vld [vmem:[#allocation8 + $0x8] sm:$0xff] }
 0x6a9   :  { %2692 = vmatpush1.bf16.msra.mxu0 %v3204_v61  ;;  %2717 = vmatpush3.bf16.msra.mxu1 %v3223_v13 }
 0x6aa   :  { %2694 = vmatprep.subr.bf16.mxu0 %v3210_v2  ;;  %2718 = vmatprep.subr.bf16.mxu1 %v3017_v0 }
 0x6ad   :  { %2696 = vmatpush1.bf16.msra.mxu0 %v3214_v7  ;;  %2720 = vmatpush3.bf16.msra.mxu1 %v3229_v18 }
 0x6ae   :  { %2721 = vmatprep.subr.bf16.mxu0 %v3017_v0  ;;  %2745 = vmatprep.subr.bf16.mxu1 %v3017_v0 }
 0x763   :  { %v1265_v17 = vpop.f32.mrb[12].mxu0  ;;  %v1336_v22 = vpop.f32.mrb[12].mxu1 }
 0x764   :  { %v1340_v30 = vadd.f32 %v1265_v17, %v144_v11  ;;  %v1267_v33 = vpop.f32.mrb[13].mxu0  ;;  %v2167_v35 = vpop.f32.mrb[13].mxu1  ;;  %v1354_v2 = vadd.f32 %v3279_v43, %v1336_v22  ;;  %v1529_v43 = vld [vmem:[#allocation8] sm:$0xff]  ;;  %v1629_v22 = vld [vmem:[#allocation10 + $0x30] sm:$0xff] }
 0x765   :  { %v1347_v42 = vadd.f32 %v1267_v33, %v145_v24  ;;  %v2722_v38 = vpack.c.bf16 %v1530_v47, %v1529_v43  ;;  %v1627_v11 = vld [vmem:[#allocation10 + $0x20] sm:$0xff]  ;;  %v1630_v24 = vld [vmem:[#allocation10 + $0x38] sm:$0xff]  ;;  %v1632_v35 = vld [vmem:[#allocation10 + $0x48] sm:$0xff] }
 0x766   :  { %v1747_v36 = vmul.f32 -1.442695, %v1340_v30  ;;  %v2752_v17 = vpack.c.bf16 %v1628_v16, %v1627_v11  ;;  %v2755_v30 = vpack.c.bf16 %v1630_v24, %v1629_v22  ;;  %v1631_v33 = vld [vmem:[#allocation10 + $0x40] sm:$0xff] }
 0x767   :  { %v1748_v44 = vmul.f32 -1.442695, %v1347_v42  ;;  %v1633_v42 = vld [vmem:[#allocation10 + $0x50] sm:$0xff] }
 0x768   :  { %2844 = vpow2.f32 %v1747_v36  ;;  %v2758_v36 = vpack.c.bf16 %v1632_v35, %v1631_v33 }
 0x769   :  { %2846 = vpow2.f32 %v1748_v44  ;;  %v1634_v44 = vld [vmem:[#allocation10 + $0x58] sm:$0xff] }
 0x772   :  { %v2845_v46 = vpop.eup %2844 }
 0x773   :  { %v1344_v52 = vadd.f32 1.0, %v2845_v46  ;;  %v2847_v54 = vpop.eup %2846  ;;  %v2761_v46 = vpack.c.bf16 %v1634_v44, %v1633_v42 }
 0x774   :  { %v1351_v61 = vadd.f32 1.0, %v2847_v54  ;;  %v1636_v54 = vld [vmem:[#allocation10 + $0x68] sm:$0xff] }
 0x775   :  { %2848 = vrcp.f32 %v1344_v52  ;;  %v1635_v52 = vld [vmem:[#allocation10 + $0x60] sm:$0xff] }
 0x776   :  { %2850 = vrcp.f32 %v1351_v61  ;;  %v2764_v55 = vpack.c.bf16 %v1636_v54, %v1635_v52  ;;  %v120_v61 = vld [vmem:[#allocation2 + $0xa8] sm:$0xff] }
 0x77f   :  { %v2849_v7 = vpop.eup %2848 }
 0x780   :  { %v1355_v8 = vmul.f32 %v2849_v7, %v1354_v2  ;;  %v2851_v18 = vpop.eup %2850  ;;  %v121_v7 = vld [vmem:[#allocation2 + $0xb0] sm:$0xff] }
 0x781   :  { %v1358_v20 = vsub.f32 1.0, %v2851_v18  ;;  %v1360_v32 = vmul.f32 %v2851_v18, %v3505_v29  ;;  %v2865_v18 = vld [vmem:[#allocation5 + $0x8] sm:$0xff] }
 0x782   :  { %v1356_v13 = vadd.f32 %v1355_v8, %v146_v63  ;;  %v2864_v63 = vld [vmem:[#allocation5] sm:$0xff] }
 0x783   :  { %v147_v2 = vadd.f32 %v2864_v63, %v120_v61 }
 0x784   :  { %2852 = vtanh.f32 %v1356_v13 }
 0x78e   :  { %v2853_v25 = vpop.eup %2852 }
 0x78f   :  { %v1359_v31 = vmul.f32 %v2853_v25, %v1358_v20  ;;  %v148_v20 = vadd.f32 %v2865_v18, %v121_v7 }
 0x791   :  { %v3549_v37 = vadd.f32 %v1360_v32, %v1359_v31 }
 0x793   :  { %1429 = vmatmul.mubr.f32.vlgmr.msra.gmra.mrb[14].mxu0 %v3549_v37  ;;  %2201 = vmatmul.mubr.f32.vlgmr.msra.gmra.mrb[14].mxu1 %v3549_v37 }
 0x794   :  { %2235 = vmatprep.mubr.msk.f32.mxu0 %vm3019_vm0, %v3018_v1  ;;  %2270 = vmatprep.mubr.msk.f32.mxu1 %vm3019_vm0, %v3018_v1  ;;  %v1536_v1 = vld [vmem:[#allocation8 + $0x38] sm:$0xff] }
 0x795   :  { %2723 = vmatpush3.bf16.msra.mxu0 %v2722_v38  ;;  %v2731_v57 = vpack.c.bf16 %v1536_v1, %v1535_v53  ;;  %2747 = vmatpush3.bf16.msra.mxu1 %v2746_v27  ;;  %v2867_v53 = vld [vmem:[%s3603_s3] ss:$0 sm:$0xff]  ;;  %v1637_v27 = vld [vmem:[#allocation10 + $0x70] sm:$0xff] }
 0x796   :  { %2724 = vmatprep.subr.bf16.mxu0 %v3017_v0  ;;  %2748 = vmatprep.subr.bf16.mxu1 %v3017_v0 }
 0x799   :  { %2726 = vmatpush3.bf16.msra.mxu0 %v2725_v45  ;;  %2750 = vmatpush3.bf16.msra.mxu1 %v2749_v10  ;;  %v122_v45 = vld [vmem:[#allocation2 + $0xb8] sm:$0xff] }
 0x79a   :  { %2727 = vmatprep.subr.bf16.mxu0 %v3017_v0  ;;  %2751 = vmatprep.subr.bf16.mxu1 %v3017_v0 }
 0x79d   :  { %2729 = vmatpush3.bf16.msra.mxu0 %v2728_v51  ;;  %2753 = vmatpush3.bf16.msra.mxu1 %v2752_v17  ;;  %v149_v51 = vadd.f32 %v2866_v50, %v122_v45 }
 0x79e   :  { %2730 = vmatprep.subr.bf16.mxu0 %v3017_v0  ;;  %2754 = vmatprep.subr.bf16.mxu1 %v3017_v0 }
 0x7a1   :  { %2732 = vmatpush3.bf16.msra.mxu0 %v2731_v57  ;;  %2756 = vmatpush3.bf16.msra.mxu1 %v2755_v30 }
 0x7a2   :  { %2733 = vmatprep.subr.bf16.mxu0 %v3017_v0  ;;  %2757 = vmatprep.subr.bf16.mxu1 %v3017_v0 }
 0x7a5   :  { %2735 = vmatpush3.bf16.msra.mxu0 %v2734_v60  ;;  %2759 = vmatpush3.bf16.msra.mxu1 %v2758_v36  ;;  %v160_v60 = vpop.permute.xlu0 %159 }
 0x7a6   :  { %2736 = vmatprep.subr.bf16.mxu0 %v3017_v0  ;;  %2760 = vmatprep.subr.bf16.mxu1 %v3017_v0  ;;  %vm372_vm1 = vcmp.eq.s32.totalorder %v160_v60, 0  ;;  %vm537_vm2 = vcmp.eq.s32.totalorder %v160_v60, 1  ;;  %vm702_vm3 = vcmp.eq.s32.totalorder %v160_v60, 2  ;;  %vm867_vm4 = vcmp.eq.s32.totalorder %v160_v60, 3 }
 0x7a7   :  { %v373_v62 = vsel %vm372_vm1, %v3285_v3, 0.0  ;;  %vm1032_vm5 = vcmp.eq.s32.totalorder %v160_v60, 4  ;;  %vm1197_vm6 = vcmp.eq.s32.totalorder %v160_v60, 5  ;;  %vm1362_vm7 = vcmp.eq.s32.totalorder %v160_v60, 6 }
 0x7a8   :  { %vm1527_vm8 = vcmp.eq.s32.totalorder %v160_v60, 7 }
 0x7a9   :  { %2738 = vmatpush3.bf16.msra.mxu0 %v2737_v4  ;;  %2762 = vmatpush3.bf16.msra.mxu1 %v2761_v46  ;;  %v538_v4 = vsel %vm537_vm2, %v3329_v56, %v373_v62 }
 0x7aa   :  { %2739 = vmatprep.subr.bf16.mxu0 %v3017_v0  ;;  %2763 = vmatprep.subr.bf16.mxu1 %v3017_v0 }
 0x7ad   :  { %2741 = vmatpush3.bf16.msra.mxu0 %v2740_v12  ;;  %2765 = vmatpush3.bf16.msra.mxu1 %v2764_v55  ;;  %v703_v12 = vsel %vm702_vm3, %v3373_v48, %v538_v4  ;;  %v2767_v48 = vpack.c.bf16 %v1638_v28, %v1637_v27 }
 0x7ae   :  { %2742 = vmatprep.subr.bf16.mxu0 %v3017_v0  ;;  %2766 = vmatprep.subr.bf16.mxu1 %v3017_v0  ;;  %v868_v14 = vsel %vm867_vm4, %v3417_v39, %v703_v12  ;;  %v1751_v39 = vld [vmem:[%s3605_s5] ss:$0 sm:$0xff] }
 0x7af   :  { %v1033_v21 = vsel %vm1032_vm5, %v3461_v34, %v868_v14 }
 0x7b0   :  { %v1198_v23 = vsel %vm1197_vm6, %v3505_v29, %v1033_v21  ;;  %v1752_v29 = vld [vmem:[%s3607_s7] ss:$0 sm:$0xff] }
 0x7b1   :  { %2744 = vmatpush3.bf16.msra.mxu0 %v2743_v19  ;;  %v1363_v26 = vsel %vm1362_vm7, %v3549_v37, %v1198_v23  ;;  %2768 = vmatpush3.bf16.msra.mxu1 %v2767_v48 }
 0x866   :  { %v1430_v8 = vpop.f32.mrb[14].mxu0  ;;  %v1501_v13 = vpop.f32.mrb[14].mxu1 }
 0x867   :  { %v1505_v25 = vadd.f32 %v1430_v8, %v147_v2  ;;  %v1432_v31 = vpop.f32.mrb[15].mxu0  ;;  %v2202_v32 = vpop.f32.mrb[15].mxu1  ;;  %v1519_v1 = vadd.f32 %v2867_v53, %v1501_v13 }
 0x868   :  { %v1512_v47 = vadd.f32 %v1432_v31, %v148_v20 }
 0x869   :  { %v1749_v43 = vmul.f32 -1.442695, %v1505_v25 }
 0x86a   :  { %v1750_v38 = vmul.f32 -1.442695, %v1512_v47 }
 0x86b   :  { %2854 = vpow2.f32 %v1749_v43 }
 0x86c   :  { %2856 = vpow2.f32 %v1750_v38 }
 0x875   :  { %v2855_v40 = vpop.eup %2854 }
 0x876   :  { %v1509_v41 = vadd.f32 1.0, %v2855_v40  ;;  %v2857_v0 = vpop.eup %2856 }
 0x877   :  { %v1516_v49 = vadd.f32 1.0, %v2857_v0 }
 0x878   :  { %2858 = vrcp.f32 %v1509_v41 }
 0x879   :  { %2860 = vrcp.f32 %v1516_v49 }
 0x882   :  { %v2859_v57 = vpop.eup %2858 }
 0x883   :  { %v1520_v58 = vmul.f32 %v2859_v57, %v1519_v1  ;;  %v2861_v6 = vpop.eup %2860 }
 0x884   :  { %v1523_v5 = vsub.f32 1.0, %v2861_v6  ;;  %v1525_v19 = vmul.f32 %v2861_v6, %v3549_v37 }
 0x885   :  { %v1521_v59 = vadd.f32 %v1520_v58, %v149_v51 }
 0x887   :  { %2862 = vtanh.f32 %v1521_v59 }
 0x891   :  { %v2863_v9 = vpop.eup %2862 }
 0x892   :  { %v1524_v15 = vmul.f32 %v2863_v9, %v1523_v5 }
 0x894   :  { %v1526_v3 = vadd.f32 %v1525_v19, %v1524_v15 }
 0x896   :  { %v1528_v56 = vsel %vm1527_vm8, %v1526_v3, %v1363_v26 }
 0x897   :  { %2236 = vmatmul.mubr.f32.vlgmr.msra.gmra.mrb[16].mxu0 %v1528_v56 }
 0x96a   :  { %v1618_v10 = vpop.f32.mrb[16].mxu0 }
 0x96b   :  { %v1619_v11 = vadd.f32 %v1751_v39, %v1618_v10  ;;  %v2237_v16 = vpop.f32.mrb[17].mxu0 }
 0x96d   :  { %v1622_v34 = vmax.f32 %v1619_v11, 0.0 }
 0x96f   :  { %2271 = vmatmul.mubr.f32.vlgmr.msra.gmra.mrb[16].mxu1 %v1622_v34 }
 0xa42   :  { %v1712_v37 = vpop.f32.mrb[16].mxu1 }
 0xa43   :  { %v1713_v17 = vadd.f32 %v1752_v29, %v1712_v37  ;;  %v2272_v22 = vpop.f32.mrb[17].mxu1 }
 0xa45   :  { %1716 = vst [vmem:[#allocation11] sm:$0xff] %v1713_v17 }
 0xa46   :  { %2989 = shalt.err (!%p2986_p2)
}
 0xa47   :  { %s2990_s18 = scalar_lea.hbm %s3609_s9, 128 }
 0xa48   :  { %p2991_p3 = scmp.ne.s32.totalorder %s3609_s9, %s2990_s18  ;;  %p2994_p4 = scmp.lt.u32.totalorder %s2990_s18, %s3609_s9 }
 0xa4a   :  { %p2996_p5 = pnand %p2994_p4, %p2991_p3 }
 0xa4c   :  { %2999 = shalt.err (!%p2996_p5)
}
 0xa4d   :  { %1726 = dma.vmem_to_hbm [thread:$0]  %s1724_s14, 128, %s3609_s9, [#allocation4]  }
 0xa4e   :  { %3006 = dma.done.wait [#allocation4], 128  }
 0xa4f   :  { %3007 = vsyncadd [#allocation4], 4294967168 }
 0xa50   :  { %1730 = vsyncpa [#allocation3], 1 }
 0xa51   :  { %1731 = vsyncpa [#allocation6], 1 }
 0xa52   :  { %1732 = vsyncpa [#allocation9], 1 }
 0xa53   :  { %1733 = vsyncpa [#allocation4], 1 }

</bundles_post_ra>
